<compile_context>
chip_gen: v6e
topology: v6e:2x2x1
jax: 0.10.0
libtpu: 0.0.40
codegen_flags: <defaults>
</compile_context>

<pallas_src>
import functools

import jax
import jax.numpy as jnp
from jax.experimental import pallas as pl
from jax.experimental.pallas import tpu as pltpu


# ---------------------------------------------------------------------------
# Tiled Pallas kernel: out = relu(A @ W + b)
# ---------------------------------------------------------------------------
def _matmul_bias_relu_kernel(a_ref, w_ref, b_ref, o_ref, acc_ref):
    k = pl.program_id(1)

    @pl.when(k == 0)
    def _():
        acc_ref[...] = jnp.zeros_like(acc_ref)

    acc_ref[...] += jnp.dot(a_ref[...], w_ref[...],
                            preferred_element_type=jnp.float32)

    @pl.when(k == pl.num_programs(1) - 1)
    def _():
        o_ref[...] = jnp.maximum(acc_ref[...] + b_ref[...], 0.0).astype(o_ref.dtype)


def _round_up(x: int, m: int) -> int:
    return (x + m - 1) // m * m


_TM_MAX = 256          # M tile (rows of the patch matrix)
_TK_SINGLE_MAX = 1024  # largest K handled as a single reduction step
_TK_TILE = 512         # K tile when K exceeds _TK_SINGLE_MAX


def _pad_k(k: int) -> int:
    kp = _round_up(k, 128)
    if kp > _TK_SINGLE_MAX:
        kp = _round_up(k, _TK_TILE)
    return kp


def matmul_bias_relu(a, w_p, b_p, n_valid, out_dtype):
    """relu(a @ w + b) on the MXU, tiled over (M, K), lane-padded N.

    a:   (M, K)  activations (cast to bf16 here).
    w_p: (Kp, Np) bf16 weight, pre-padded with zeros (Kp >= K, Np % 128 == 0).
    b_p: (1, Np)  f32 bias, zero-padded.
    Returns (M, n_valid) in out_dtype.
    """
    M, K = a.shape
    Kp, Np = w_p.shape
    assert Kp >= K and Np % 128 == 0

    TM = min(_TM_MAX, _round_up(M, 8))
    Mp = _round_up(M, TM)
    TK = Kp if Kp <= _TK_SINGLE_MAX else _TK_TILE
    assert Kp % TK == 0

    a = a.astype(jnp.bfloat16)
    if (Mp, Kp) != (M, K):
        a = jnp.pad(a, ((0, Mp - M), (0, Kp - K)))

    grid = (Mp // TM, Kp // TK)
    out_bytes = Mp * Np * jnp.dtype(out_dtype).itemsize
    cost = pl.CostEstimate(
        flops=int(2 * Mp * Kp * Np),
        transcendentals=0,
        bytes_accessed=int(Mp * Kp * 2 + Kp * Np * 2 + Np * 4 + out_bytes),
    )

    out = pl.pallas_call(
        _matmul_bias_relu_kernel,
        out_shape=jax.ShapeDtypeStruct((Mp, Np), out_dtype),
        grid_spec=pltpu.PrefetchScalarGridSpec(
            num_scalar_prefetch=0,
            grid=grid,
            in_specs=[
                pl.BlockSpec((TM, TK), lambda i, k: (i, k)),
                pl.BlockSpec((TK, Np), lambda i, k: (k, 0)),
                pl.BlockSpec((1, Np), lambda i, k: (0, 0)),
            ],
            out_specs=pl.BlockSpec((TM, Np), lambda i, k: (i, 0)),
            scratch_shapes=[pltpu.VMEM((TM, Np), jnp.float32)],
        ),
        compiler_params=pltpu.CompilerParams(
            dimension_semantics=("parallel", "arbitrary"),
            vmem_limit_bytes=32 * 1024 * 1024,
        ),
        cost_estimate=cost,
    )(a, w_p, b_p)
    return out[:M, :n_valid]


# ---------------------------------------------------------------------------
# Plain-JAX glue: NHWC im2col via strided slices (no gather)
# ---------------------------------------------------------------------------
def _im2col_nhwc(x, k, s):
    """x: (B, H, W, C) -> ((B*Ho*Wo, k*k*C), Ho, Wo); columns in (kh, kw, C) order."""
    B, H, W, C = x.shape
    Ho = (H - k) // s + 1
    Wo = (W - k) // s + 1
    cols = []
    for kh in range(k):
        for kw in range(k):
            cols.append(jax.lax.slice(
                x,
                (0, kh, kw, 0),
                (B, kh + (Ho - 1) * s + 1, kw + (Wo - 1) * s + 1, C),
                (1, s, s, 1)))
    patches = jnp.concatenate(cols, axis=-1)          # (B, Ho, Wo, k*k*C)
    # TODO(synk): fuse im2col fully into the matmul kernel (sum of kh*kw shifted
    # matmuls on a VMEM-resident input tile) to remove this HBM intermediate.
    return patches.reshape(B * Ho * Wo, k * k * C), Ho, Wo


def _conv2d_relu_nhwc(x, w_p, b_p, cout, k, s):
    """x: (B, H, W, Cin) bf16 -> (B, Ho, Wo, cout) bf16, channels-last."""
    B = x.shape[0]
    patches, Ho, Wo = _im2col_nhwc(x, k, s)
    y = matmul_bias_relu(patches, w_p, b_p, n_valid=cout, out_dtype=jnp.bfloat16)
    return y.reshape(B, Ho, Wo, cout)


# ---------------------------------------------------------------------------
# Parameters: torch-layout init + one-time packing into matmul layout
# ---------------------------------------------------------------------------
_CONV_SPECS = ((32, 8, 4), (64, 4, 2), (64, 3, 1))   # (Cout, kernel, stride)


def _conv_out_hw(h, w):
    shapes = []
    for _, k, s in _CONV_SPECS:
        h = (h - k) // s + 1
        w = (w - k) // s + 1
        shapes.append((h, w))
    return shapes


def nature_cnn_init(key, input_dims, image_features_dim):
    """Deterministic synthetic parameters with the PyTorch shapes/layout."""
    c_in, h, w = input_dims
    ks = jax.random.split(key, 8)

    def conv_w(k, cout, cin, ksz):
        fan_in = cin * ksz * ksz
        return jax.random.normal(k, (cout, cin, ksz, ksz), jnp.float32) * (fan_in ** -0.5)

    cins = (c_in, 32, 64)
    params = {}
    for i, ((cout, ksz, _), cin) in enumerate(zip(_CONV_SPECS, cins), start=1):
        params[f"conv{i}_w"] = conv_w(ks[2 * i - 2], cout, cin, ksz)
        params[f"conv{i}_b"] = jax.random.normal(ks[2 * i - 1], (cout,), jnp.float32) * 0.01
    h3, w3 = _conv_out_hw(h, w)[-1]
    n_flatten = 64 * h3 * w3
    params["lin_w"] = jax.random.normal(
        ks[6], (image_features_dim, n_flatten), jnp.float32) * (n_flatten ** -0.5)
    params["lin_b"] = jax.random.normal(ks[7], (image_features_dim,), jnp.float32) * 0.01
    return params


def _pack_matmul_weight(w_mat, b):
    """(K, N) f32 weight + (N,) bias -> bf16 (Kp, Np) weight, f32 (1, Np) bias."""
    K, N = w_mat.shape
    Kp = _pad_k(K)
    Np = _round_up(N, 128)
    w_p = jnp.pad(w_mat, ((0, Kp - K), (0, Np - N))).astype(jnp.bfloat16)
    b_p = jnp.pad(b, (0, Np - N)).astype(jnp.float32).reshape(1, Np)
    return w_p, b_p


def pack_params(params, input_dims, image_features_dim):
    """One-time conversion: torch layout -> padded bf16 matmul weights (NHWC)."""
    c_in, h, w = input_dims
    cins = (c_in, 32, 64)
    convs = []
    for i, ((cout, ksz, _), cin) in enumerate(zip(_CONV_SPECS, cins), start=1):
        wt = params[f"conv{i}_w"]                                    # (cout, cin, k, k)
        w_mat = jnp.transpose(wt, (2, 3, 1, 0)).reshape(ksz * ksz * cin, cout)
        convs.append(_pack_matmul_weight(w_mat, params[f"conv{i}_b"]))
    h3, w3 = _conv_out_hw(h, w)[-1]
    F = image_features_dim
    # torch Linear weight is (F, n_flatten) over an NCHW flatten; permute once
    # to the NHWC flatten order used by the Pallas path, and pre-transpose.
    lw = params["lin_w"].reshape(F, 64, h3, w3)
    lw = jnp.transpose(lw, (0, 2, 3, 1)).reshape(F, h3 * w3 * 64)
    linear = _pack_matmul_weight(lw.T, params["lin_b"])
    return {"convs": convs, "linear": linear}


# ---------------------------------------------------------------------------
# Full AugmentedNatureCNNDictLikeGray forward
# ---------------------------------------------------------------------------
@functools.partial(jax.jit, static_argnames=("num_direct_features", "image_features_dim"))
def augmented_nature_cnn_forward(packed, gray, sensor_pad, *,
                                 num_direct_features, image_features_dim):
    """gray: (B,C,H,W) f32, sensor_pad: (B,...) -> (B, image_features_dim+num_direct)."""
    B = gray.shape[0]
    # torch.cat([obs['gray']], axis=1) is an identity concat -> just use gray.
    x = jnp.transpose(gray, (0, 2, 3, 1)).astype(jnp.bfloat16)       # NHWC, once
    for (cout, ksz, stride), (w_p, b_p) in zip(_CONV_SPECS, packed["convs"]):
        x = _conv2d_relu_nhwc(x, w_p, b_p, cout, ksz, stride)
    flat = x.reshape(B, -1)                                          # NHWC flatten
    w_p, b_p = packed["linear"]
    img_feat = matmul_bias_relu(flat, w_p, b_p, n_valid=image_features_dim,
                                out_dtype=jnp.float32)
    other = sensor_pad.reshape(B, -1)[:, :num_direct_features].astype(jnp.float32)
    return jnp.concatenate([img_feat, other], axis=-1)


# ---------------------------------------------------------------------------
# Pure-JAX f32 reference (torch semantics: NCHW, f32 everywhere)
# ---------------------------------------------------------------------------
def _ref_forward(params, gray, sensor_pad, num_direct_features):
    def conv(x, w, b, s):
        y = jax.lax.conv_general_dilated(
            x, w, window_strides=(s, s), padding="VALID",
            dimension_numbers=("NCHW", "OIHW", "NCHW"))
        return jax.nn.relu(y + b[None, :, None, None])
    y = conv(gray, params["conv1_w"], params["conv1_b"], 4)
    y = conv(y, params["conv2_w"], params["conv2_b"], 2)
    y = conv(y, params["conv3_w"], params["conv3_b"], 1)
    flat = y.reshape(y.shape[0], -1)                                 # NCHW flatten
    img = jax.nn.relu(flat @ params["lin_w"].T + params["lin_b"])
    other = sensor_pad.reshape(sensor_pad.shape[0], -1)[:, :num_direct_features]
    return jnp.concatenate([img, other], axis=-1)


if __name__ == "__main__":
    # spatial=68 is the smallest "interesting" size: conv stack 68 -> 16 -> 7 -> 5,
    # which exercises M tiling (conv1), K tiling (linear, K=1600 -> 4 steps) and
    # the NHWC permutation of the linear weight (h3=w3=5).
    batch, channels, spatial = 2, 4, 68
    image_features_dim = 512
    num_direct_features = 10
    input_dims = (channels, spatial, spatial)

    key = jax.random.PRNGKey(0)
    k_params, k_gray, k_sensor = jax.random.split(key, 3)
    params = nature_cnn_init(k_params, input_dims, image_features_dim)
    gray = jax.random.normal(k_gray, (batch, channels, spatial, spatial), jnp.float32)
    sensor_pad = jax.random.normal(k_sensor, (batch, 4, 4), jnp.float32)

    packed = pack_params(params, input_dims, image_features_dim)

    out = augmented_nature_cnn_forward(
        packed, gray, sensor_pad,
        num_direct_features=num_direct_features,
        image_features_dim=image_features_dim)
    out = jax.block_until_ready(out)
    assert out.shape == (batch, image_features_dim + num_direct_features), out.shape

    ref = jax.block_until_ready(
        _ref_forward(params, gray, sensor_pad, num_direct_features))
    # bf16 MXU operands (f32 accumulation) -> loosened tolerance vs f32 reference.
    assert jnp.allclose(out, ref, atol=5e-2, rtol=5e-2), (
        "max abs err = " + str(float(jnp.max(jnp.abs(out - ref)))))
    print("KERNEL_OK")
</pallas_src>

<mosaic_0001>
module attributes {stable_mosaic.version = 11 : i64} {
  func.func @_matmul_bias_relu_kernel(%arg0: i32, %arg1: i32, %arg2: memref<256x256xbf16, #tpu.memory_space<vmem>>, %arg3: memref<256x128xbf16, #tpu.memory_space<vmem>>, %arg4: memref<1x128xf32, #tpu.memory_space<vmem>>, %arg5: memref<256x128xbf16, #tpu.memory_space<vmem>>, %arg6: memref<256x128xf32, #tpu.memory_space<vmem>>) attributes {dimension_semantics = [#tpu.dimension_semantics<parallel>, #tpu.dimension_semantics<arbitrary>], iteration_bounds = array<i64: 2, 1>, scalar_prefetch = 0 : i64, scratch_operands = 1 : i64, tpu.core_type = #tpu.core_type<tc>, window_params = [{transform_indices = @transform_0, window_bounds = array<i64: 256, 256>}, {transform_indices = @transform_1, window_bounds = array<i64: 256, 128>}, {pipeline_mode = #tpu.pipeline_mode<synchronous>, transform_indices = @transform_2, window_bounds = array<i64: 1, 128>}, {transform_indices = @transform_3, window_bounds = array<i64: 256, 128>}]} {
    %c0_i32 = arith.constant 0 : i32
    %0 = arith.cmpi eq, %arg1, %c0_i32 : i32
    %1 = arith.extui %0 : i1 to i32
    %c0_i32_0 = arith.constant 0 : i32
    %2 = arith.cmpi ne, %1, %c0_i32_0 : i32
    scf.if %2 {
      %cst_10 = arith.constant 0.000000e+00 : f32
      %12 = vector.broadcast %cst_10 : f32 to vector<256x128xf32>
      %c0_11 = arith.constant 0 : index
      %c0_12 = arith.constant 0 : index
      %13 = vector.load %arg6[%c0_11, %c0_12] : memref<256x128xf32, #tpu.memory_space<vmem>>, vector<256x128xf32>
      tpu.vector_store %arg6[%c0_11, %c0_12], %12 {strides = array<i32>} : memref<256x128xf32, #tpu.memory_space<vmem>>, vector<256x128xf32>,
    } else {
    }
    %c0 = arith.constant 0 : index
    %c0_1 = arith.constant 0 : index
    %3 = vector.load %arg6[%c0, %c0_1] : memref<256x128xf32, #tpu.memory_space<vmem>>, vector<256x128xf32>
    %c0_2 = arith.constant 0 : index
    %c0_3 = arith.constant 0 : index
    %4 = vector.load %arg2[%c0_2, %c0_3] : memref<256x256xbf16, #tpu.memory_space<vmem>>, vector<256x256xbf16>
    %c0_4 = arith.constant 0 : index
    %c0_5 = arith.constant 0 : index
    %5 = vector.load %arg3[%c0_4, %c0_5] : memref<256x128xbf16, #tpu.memory_space<vmem>>, vector<256x128xbf16>
    %cst = arith.constant dense<0.000000e+00> : vector<256x128xf32>
    %6 = tpu.matmul %4, %5, %cst {dimension_numbers = #tpu.dot_dimension_numbers<[1], [0], [0], [1], [0, 0, 1, 1], [], []>} : vector<256x256xbf16>, vector<256x128xbf16>, vector<256x128xf32> -> vector<256x128xf32>
    %7 = arith.addf %3, %6 : vector<256x128xf32>
    %c0_6 = arith.constant 0 : index
    %c0_7 = arith.constant 0 : index
    %8 = vector.load %arg6[%c0_6, %c0_7] : memref<256x128xf32, #tpu.memory_space<vmem>>, vector<256x128xf32>
    tpu.vector_store %arg6[%c0_6, %c0_7], %7 {strides = array<i32>} : memref<256x128xf32, #tpu.memory_space<vmem>>, vector<256x128xf32>,
    %c0_i32_8 = arith.constant 0 : i32
    %9 = arith.cmpi eq, %arg1, %c0_i32_8 : i32
    %10 = arith.extui %9 : i1 to i32
    %c0_i32_9 = arith.constant 0 : i32
    %11 = arith.cmpi ne, %10, %c0_i32_9 : i32
    scf.if %11 {
      %c0_10 = arith.constant 0 : index
      %c0_11 = arith.constant 0 : index
      %12 = vector.load %arg6[%c0_10, %c0_11] : memref<256x128xf32, #tpu.memory_space<vmem>>, vector<256x128xf32>
      %c0_12 = arith.constant 0 : index
      %c0_13 = arith.constant 0 : index
      %13 = vector.load %arg4[%c0_12, %c0_13] : memref<1x128xf32, #tpu.memory_space<vmem>>, vector<1x128xf32>
      %14 = vector.broadcast %13 : vector<1x128xf32> to vector<256x128xf32>
      %15 = arith.addf %12, %14 : vector<256x128xf32>
      %cst_14 = arith.constant 0.000000e+00 : f32
      %16 = vector.broadcast %cst_14 : f32 to vector<256x128xf32>
      %17 = arith.maximumf %15, %16 : vector<256x128xf32>
      %18 = arith.truncf %17 : vector<256x128xf32> to vector<256x128xbf16>
      %c0_15 = arith.constant 0 : index
      %c0_16 = arith.constant 0 : index
      %19 = vector.load %arg5[%c0_15, %c0_16] : memref<256x128xbf16, #tpu.memory_space<vmem>>, vector<256x128xbf16>
      tpu.vector_store %arg5[%c0_15, %c0_16], %18 {strides = array<i32>} : memref<256x128xbf16, #tpu.memory_space<vmem>>, vector<256x128xbf16>,
    } else {
    }
    return
  }
  func.func @transform_0(%arg0: i32, %arg1: i32) -> (i32, i32) {
    %c0_i32 = arith.constant 0 : i32
    return %arg0, %arg1 : i32, i32
  }
  func.func @transform_1(%arg0: i32, %arg1: i32) -> (i32, i32) {
    %c0_i32 = arith.constant 0 : i32
    %c0_i32_0 = arith.constant 0 : i32
    return %arg1, %c0_i32 : i32, i32
  }
  func.func @transform_2(%arg0: i32, %arg1: i32) -> (i32, i32) {
    %c0_i32 = arith.constant 0 : i32
    %c0_i32_0 = arith.constant 0 : i32
    %c0_i32_1 = arith.constant 0 : i32
    return %c0_i32, %c0_i32_0 : i32, i32
  }
  func.func @transform_3(%arg0: i32, %arg1: i32) -> (i32, i32) {
    %c0_i32 = arith.constant 0 : i32
    %c0_i32_0 = arith.constant 0 : i32
    return %arg0, %c0_i32 : i32, i32
  }
}

module attributes {stable_mosaic.version = 11 : i64} {
  func.func @_matmul_bias_relu_kernel(%arg0: i32, %arg1: i32, %arg2: memref<104x512xbf16, #tpu.memory_space<vmem>>, %arg3: memref<512x128xbf16, #tpu.memory_space<vmem>>, %arg4: memref<1x128xf32, #tpu.memory_space<vmem>>, %arg5: memref<104x128xbf16, #tpu.memory_space<vmem>>, %arg6: memref<104x128xf32, #tpu.memory_space<vmem>>) attributes {dimension_semantics = [#tpu.dimension_semantics<parallel>, #tpu.dimension_semantics<arbitrary>], iteration_bounds = array<i64: 1, 1>, scalar_prefetch = 0 : i64, scratch_operands = 1 : i64, tpu.core_type = #tpu.core_type<tc>, window_params = [{transform_indices = @transform_0, window_bounds = array<i64: 104, 512>}, {transform_indices = @transform_1, window_bounds = array<i64: 512, 128>}, {pipeline_mode = #tpu.pipeline_mode<synchronous>, transform_indices = @transform_2, window_bounds = array<i64: 1, 128>}, {transform_indices = @transform_3, window_bounds = array<i64: 104, 128>}]} {
    %c0_i32 = arith.constant 0 : i32
    %0 = arith.cmpi eq, %arg1, %c0_i32 : i32
    %1 = arith.extui %0 : i1 to i32
    %c0_i32_0 = arith.constant 0 : i32
    %2 = arith.cmpi ne, %1, %c0_i32_0 : i32
    scf.if %2 {
      %cst_10 = arith.constant 0.000000e+00 : f32
      %12 = vector.broadcast %cst_10 : f32 to vector<104x128xf32>
      %c0_11 = arith.constant 0 : index
      %c0_12 = arith.constant 0 : index
      %13 = vector.load %arg6[%c0_11, %c0_12] : memref<104x128xf32, #tpu.memory_space<vmem>>, vector<104x128xf32>
      tpu.vector_store %arg6[%c0_11, %c0_12], %12 {strides = array<i32>} : memref<104x128xf32, #tpu.memory_space<vmem>>, vector<104x128xf32>,
    } else {
    }
    %c0 = arith.constant 0 : index
    %c0_1 = arith.constant 0 : index
    %3 = vector.load %arg6[%c0, %c0_1] : memref<104x128xf32, #tpu.memory_space<vmem>>, vector<104x128xf32>
    %c0_2 = arith.constant 0 : index
    %c0_3 = arith.constant 0 : index
    %4 = vector.load %arg2[%c0_2, %c0_3] : memref<104x512xbf16, #tpu.memory_space<vmem>>, vector<104x512xbf16>
    %c0_4 = arith.constant 0 : index
    %c0_5 = arith.constant 0 : index
    %5 = vector.load %arg3[%c0_4, %c0_5] : memref<512x128xbf16, #tpu.memory_space<vmem>>, vector<512x128xbf16>
    %cst = arith.constant dense<0.000000e+00> : vector<104x128xf32>
    %6 = tpu.matmul %4, %5, %cst {dimension_numbers = #tpu.dot_dimension_numbers<[1], [0], [0], [1], [0, 0, 1, 1], [], []>} : vector<104x512xbf16>, vector<512x128xbf16>, vector<104x128xf32> -> vector<104x128xf32>
    %7 = arith.addf %3, %6 : vector<104x128xf32>
    %c0_6 = arith.constant 0 : index
    %c0_7 = arith.constant 0 : index
    %8 = vector.load %arg6[%c0_6, %c0_7] : memref<104x128xf32, #tpu.memory_space<vmem>>, vector<104x128xf32>
    tpu.vector_store %arg6[%c0_6, %c0_7], %7 {strides = array<i32>} : memref<104x128xf32, #tpu.memory_space<vmem>>, vector<104x128xf32>,
    %c0_i32_8 = arith.constant 0 : i32
    %9 = arith.cmpi eq, %arg1, %c0_i32_8 : i32
    %10 = arith.extui %9 : i1 to i32
    %c0_i32_9 = arith.constant 0 : i32
    %11 = arith.cmpi ne, %10, %c0_i32_9 : i32
    scf.if %11 {
      %c0_10 = arith.constant 0 : index
      %c0_11 = arith.constant 0 : index
      %12 = vector.load %arg6[%c0_10, %c0_11] : memref<104x128xf32, #tpu.memory_space<vmem>>, vector<104x128xf32>
      %c0_12 = arith.constant 0 : index
      %c0_13 = arith.constant 0 : index
      %13 = vector.load %arg4[%c0_12, %c0_13] : memref<1x128xf32, #tpu.memory_space<vmem>>, vector<1x128xf32>
      %14 = vector.broadcast %13 : vector<1x128xf32> to vector<104x128xf32>
      %15 = arith.addf %12, %14 : vector<104x128xf32>
      %cst_14 = arith.constant 0.000000e+00 : f32
      %16 = vector.broadcast %cst_14 : f32 to vector<104x128xf32>
      %17 = arith.maximumf %15, %16 : vector<104x128xf32>
      %18 = arith.truncf %17 : vector<104x128xf32> to vector<104x128xbf16>
      %c0_15 = arith.constant 0 : index
      %c0_16 = arith.constant 0 : index
      %19 = vector.load %arg5[%c0_15, %c0_16] : memref<104x128xbf16, #tpu.memory_space<vmem>>, vector<104x128xbf16>
      tpu.vector_store %arg5[%c0_15, %c0_16], %18 {strides = array<i32>} : memref<104x128xbf16, #tpu.memory_space<vmem>>, vector<104x128xbf16>,
    } else {
    }
    return
  }
  func.func @transform_0(%arg0: i32, %arg1: i32) -> (i32, i32) {
    %c0_i32 = arith.constant 0 : i32
    return %arg0, %arg1 : i32, i32
  }
  func.func @transform_1(%arg0: i32, %arg1: i32) -> (i32, i32) {
    %c0_i32 = arith.constant 0 : i32
    %c0_i32_0 = arith.constant 0 : i32
    return %arg1, %c0_i32 : i32, i32
  }
  func.func @transform_2(%arg0: i32, %arg1: i32) -> (i32, i32) {
    %c0_i32 = arith.constant 0 : i32
    %c0_i32_0 = arith.constant 0 : i32
    %c0_i32_1 = arith.constant 0 : i32
    return %c0_i32, %c0_i32_0 : i32, i32
  }
  func.func @transform_3(%arg0: i32, %arg1: i32) -> (i32, i32) {
    %c0_i32 = arith.constant 0 : i32
    %c0_i32_0 = arith.constant 0 : i32
    return %arg0, %c0_i32 : i32, i32
  }
}

module attributes {stable_mosaic.version = 11 : i64} {
  func.func @_matmul_bias_relu_kernel(%arg0: i32, %arg1: i32, %arg2: memref<8x512xbf16, #tpu.memory_space<vmem>>, %arg3: memref<512x512xbf16, #tpu.memory_space<vmem>>, %arg4: memref<1x512xf32, #tpu.memory_space<vmem>>, %arg5: memref<8x512xf32, #tpu.memory_space<vmem>>, %arg6: memref<8x512xf32, #tpu.memory_space<vmem>>) attributes {dimension_semantics = [#tpu.dimension_semantics<parallel>, #tpu.dimension_semantics<arbitrary>], iteration_bounds = array<i64: 1, 4>, scalar_prefetch = 0 : i64, scratch_operands = 1 : i64, tpu.core_type = #tpu.core_type<tc>, window_params = [{transform_indices = @transform_0, window_bounds = array<i64: 8, 512>}, {transform_indices = @transform_1, window_bounds = array<i64: 512, 512>}, {pipeline_mode = #tpu.pipeline_mode<synchronous>, transform_indices = @transform_2, window_bounds = array<i64: 1, 512>}, {transform_indices = @transform_3, window_bounds = array<i64: 8, 512>}]} {
    %c0_i32 = arith.constant 0 : i32
    %0 = arith.cmpi eq, %arg1, %c0_i32 : i32
    %1 = arith.extui %0 : i1 to i32
    %c0_i32_0 = arith.constant 0 : i32
    %2 = arith.cmpi ne, %1, %c0_i32_0 : i32
    scf.if %2 {
      %cst_9 = arith.constant 0.000000e+00 : f32
      %12 = vector.broadcast %cst_9 : f32 to vector<8x512xf32>
      %c0_10 = arith.constant 0 : index
      %c0_11 = arith.constant 0 : index
      %13 = vector.load %arg6[%c0_10, %c0_11] : memref<8x512xf32, #tpu.memory_space<vmem>>, vector<8x512xf32>
      tpu.vector_store %arg6[%c0_10, %c0_11], %12 {strides = array<i32>} : memref<8x512xf32, #tpu.memory_space<vmem>>, vector<8x512xf32>,
    } else {
    }
    %c0 = arith.constant 0 : index
    %c0_1 = arith.constant 0 : index
    %3 = vector.load %arg6[%c0, %c0_1] : memref<8x512xf32, #tpu.memory_space<vmem>>, vector<8x512xf32>
    %c0_2 = arith.constant 0 : index
    %c0_3 = arith.constant 0 : index
    %4 = vector.load %arg2[%c0_2, %c0_3] : memref<8x512xbf16, #tpu.memory_space<vmem>>, vector<8x512xbf16>
    %c0_4 = arith.constant 0 : index
    %c0_5 = arith.constant 0 : index
    %5 = vector.load %arg3[%c0_4, %c0_5] : memref<512x512xbf16, #tpu.memory_space<vmem>>, vector<512x512xbf16>
    %cst = arith.constant dense<0.000000e+00> : vector<8x512xf32>
    %6 = tpu.matmul %4, %5, %cst {dimension_numbers = #tpu.dot_dimension_numbers<[1], [0], [0], [1], [0, 0, 1, 1], [], []>} : vector<8x512xbf16>, vector<512x512xbf16>, vector<8x512xf32> -> vector<8x512xf32>
    %7 = arith.addf %3, %6 : vector<8x512xf32>
    %c0_6 = arith.constant 0 : index
    %c0_7 = arith.constant 0 : index
    %8 = vector.load %arg6[%c0_6, %c0_7] : memref<8x512xf32, #tpu.memory_space<vmem>>, vector<8x512xf32>
    tpu.vector_store %arg6[%c0_6, %c0_7], %7 {strides = array<i32>} : memref<8x512xf32, #tpu.memory_space<vmem>>, vector<8x512xf32>,
    %c3_i32 = arith.constant 3 : i32
    %9 = arith.cmpi eq, %arg1, %c3_i32 : i32
    %10 = arith.extui %9 : i1 to i32
    %c0_i32_8 = arith.constant 0 : i32
    %11 = arith.cmpi ne, %10, %c0_i32_8 : i32
    scf.if %11 {
      %c0_9 = arith.constant 0 : index
      %c0_10 = arith.constant 0 : index
      %12 = vector.load %arg6[%c0_9, %c0_10] : memref<8x512xf32, #tpu.memory_space<vmem>>, vector<8x512xf32>
      %c0_11 = arith.constant 0 : index
      %c0_12 = arith.constant 0 : index
      %13 = vector.load %arg4[%c0_11, %c0_12] : memref<1x512xf32, #tpu.memory_space<vmem>>, vector<1x512xf32>
      %14 = vector.broadcast %13 : vector<1x512xf32> to vector<8x512xf32>
      %15 = arith.addf %12, %14 : vector<8x512xf32>
      %cst_13 = arith.constant 0.000000e+00 : f32
      %16 = vector.broadcast %cst_13 : f32 to vector<8x512xf32>
      %17 = arith.maximumf %15, %16 : vector<8x512xf32>
      %c0_14 = arith.constant 0 : index
      %c0_15 = arith.constant 0 : index
      %18 = vector.load %arg5[%c0_14, %c0_15] : memref<8x512xf32, #tpu.memory_space<vmem>>, vector<8x512xf32>
      tpu.vector_store %arg5[%c0_14, %c0_15], %17 {strides = array<i32>} : memref<8x512xf32, #tpu.memory_space<vmem>>, vector<8x512xf32>,
    } else {
    }
    return
  }
  func.func @transform_0(%arg0: i32, %arg1: i32) -> (i32, i32) {
    %c0_i32 = arith.constant 0 : i32
    return %arg0, %arg1 : i32, i32
  }
  func.func @transform_1(%arg0: i32, %arg1: i32) -> (i32, i32) {
    %c0_i32 = arith.constant 0 : i32
    %c0_i32_0 = arith.constant 0 : i32
    return %arg1, %c0_i32 : i32, i32
  }
  func.func @transform_2(%arg0: i32, %arg1: i32) -> (i32, i32) {
    %c0_i32 = arith.constant 0 : i32
    %c0_i32_0 = arith.constant 0 : i32
    %c0_i32_1 = arith.constant 0 : i32
    return %c0_i32, %c0_i32_0 : i32, i32
  }
  func.func @transform_3(%arg0: i32, %arg1: i32) -> (i32, i32) {
    %c0_i32 = arith.constant 0 : i32
    %c0_i32_0 = arith.constant 0 : i32
    return %arg0, %c0_i32 : i32, i32
  }
}

module attributes {stable_mosaic.version = 11 : i64} {
  func.func @_matmul_bias_relu_kernel(%arg0: i32, %arg1: i32, %arg2: memref<56x640xbf16, #tpu.memory_space<vmem>>, %arg3: memref<640x128xbf16, #tpu.memory_space<vmem>>, %arg4: memref<1x128xf32, #tpu.memory_space<vmem>>, %arg5: memref<56x128xbf16, #tpu.memory_space<vmem>>, %arg6: memref<56x128xf32, #tpu.memory_space<vmem>>) attributes {dimension_semantics = [#tpu.dimension_semantics<parallel>, #tpu.dimension_semantics<arbitrary>], iteration_bounds = array<i64: 1, 1>, scalar_prefetch = 0 : i64, scratch_operands = 1 : i64, tpu.core_type = #tpu.core_type<tc>, window_params = [{transform_indices = @transform_0, window_bounds = array<i64: 56, 640>}, {transform_indices = @transform_1, window_bounds = array<i64: 640, 128>}, {pipeline_mode = #tpu.pipeline_mode<synchronous>, transform_indices = @transform_2, window_bounds = array<i64: 1, 128>}, {transform_indices = @transform_3, window_bounds = array<i64: 56, 128>}]} {
    %c0_i32 = arith.constant 0 : i32
    %0 = arith.cmpi eq, %arg1, %c0_i32 : i32
    %1 = arith.extui %0 : i1 to i32
    %c0_i32_0 = arith.constant 0 : i32
    %2 = arith.cmpi ne, %1, %c0_i32_0 : i32
    scf.if %2 {
      %cst_10 = arith.constant 0.000000e+00 : f32
      %12 = vector.broadcast %cst_10 : f32 to vector<56x128xf32>
      %c0_11 = arith.constant 0 : index
      %c0_12 = arith.constant 0 : index
      %13 = vector.load %arg6[%c0_11, %c0_12] : memref<56x128xf32, #tpu.memory_space<vmem>>, vector<56x128xf32>
      tpu.vector_store %arg6[%c0_11, %c0_12], %12 {strides = array<i32>} : memref<56x128xf32, #tpu.memory_space<vmem>>, vector<56x128xf32>,
    } else {
    }
    %c0 = arith.constant 0 : index
    %c0_1 = arith.constant 0 : index
    %3 = vector.load %arg6[%c0, %c0_1] : memref<56x128xf32, #tpu.memory_space<vmem>>, vector<56x128xf32>
    %c0_2 = arith.constant 0 : index
    %c0_3 = arith.constant 0 : index
    %4 = vector.load %arg2[%c0_2, %c0_3] : memref<56x640xbf16, #tpu.memory_space<vmem>>, vector<56x640xbf16>
    %c0_4 = arith.constant 0 : index
    %c0_5 = arith.constant 0 : index
    %5 = vector.load %arg3[%c0_4, %c0_5] : memref<640x128xbf16, #tpu.memory_space<vmem>>, vector<640x128xbf16>
    %cst = arith.constant dense<0.000000e+00> : vector<56x128xf32>
    %6 = tpu.matmul %4, %5, %cst {dimension_numbers = #tpu.dot_dimension_numbers<[1], [0], [0], [1], [0, 0, 1, 1], [], []>} : vector<56x640xbf16>, vector<640x128xbf16>, vector<56x128xf32> -> vector<56x128xf32>
    %7 = arith.addf %3, %6 : vector<56x128xf32>
    %c0_6 = arith.constant 0 : index
    %c0_7 = arith.constant 0 : index
    %8 = vector.load %arg6[%c0_6, %c0_7] : memref<56x128xf32, #tpu.memory_space<vmem>>, vector<56x128xf32>
    tpu.vector_store %arg6[%c0_6, %c0_7], %7 {strides = array<i32>} : memref<56x128xf32, #tpu.memory_space<vmem>>, vector<56x128xf32>,
    %c0_i32_8 = arith.constant 0 : i32
    %9 = arith.cmpi eq, %arg1, %c0_i32_8 : i32
    %10 = arith.extui %9 : i1 to i32
    %c0_i32_9 = arith.constant 0 : i32
    %11 = arith.cmpi ne, %10, %c0_i32_9 : i32
    scf.if %11 {
      %c0_10 = arith.constant 0 : index
      %c0_11 = arith.constant 0 : index
      %12 = vector.load %arg6[%c0_10, %c0_11] : memref<56x128xf32, #tpu.memory_space<vmem>>, vector<56x128xf32>
      %c0_12 = arith.constant 0 : index
      %c0_13 = arith.constant 0 : index
      %13 = vector.load %arg4[%c0_12, %c0_13] : memref<1x128xf32, #tpu.memory_space<vmem>>, vector<1x128xf32>
      %14 = vector.broadcast %13 : vector<1x128xf32> to vector<56x128xf32>
      %15 = arith.addf %12, %14 : vector<56x128xf32>
      %cst_14 = arith.constant 0.000000e+00 : f32
      %16 = vector.broadcast %cst_14 : f32 to vector<56x128xf32>
      %17 = arith.maximumf %15, %16 : vector<56x128xf32>
      %18 = arith.truncf %17 : vector<56x128xf32> to vector<56x128xbf16>
      %c0_15 = arith.constant 0 : index
      %c0_16 = arith.constant 0 : index
      %19 = vector.load %arg5[%c0_15, %c0_16] : memref<56x128xbf16, #tpu.memory_space<vmem>>, vector<56x128xbf16>
      tpu.vector_store %arg5[%c0_15, %c0_16], %18 {strides = array<i32>} : memref<56x128xbf16, #tpu.memory_space<vmem>>, vector<56x128xbf16>,
    } else {
    }
    return
  }
  func.func @transform_0(%arg0: i32, %arg1: i32) -> (i32, i32) {
    %c0_i32 = arith.constant 0 : i32
    return %arg0, %arg1 : i32, i32
  }
  func.func @transform_1(%arg0: i32, %arg1: i32) -> (i32, i32) {
    %c0_i32 = arith.constant 0 : i32
    %c0_i32_0 = arith.constant 0 : i32
    return %arg1, %c0_i32 : i32, i32
  }
  func.func @transform_2(%arg0: i32, %arg1: i32) -> (i32, i32) {
    %c0_i32 = arith.constant 0 : i32
    %c0_i32_0 = arith.constant 0 : i32
    %c0_i32_1 = arith.constant 0 : i32
    return %c0_i32, %c0_i32_0 : i32, i32
  }
  func.func @transform_3(%arg0: i32, %arg1: i32) -> (i32, i32) {
    %c0_i32 = arith.constant 0 : i32
    %c0_i32_0 = arith.constant 0 : i32
    return %arg0, %c0_i32 : i32, i32
  }
}

</mosaic_0001>

<bundles_post_ra>
// kernel: augmented_nature_cnn_forward.4
= control target key start
LH: loop header
LB: loop body
LE: loop exit
PB: predicated region body
PF: predicated region fallthrough
CT: control target
= control target key end

     0   :  { %s1675_s12 = smov 0   ;;  %s1677_s13 = smov 0   ;;  %s1849_s0 = inlined_call_operand.vmem [shape: bf16[512,256], index: 0, kind: input, shape index: {}]   ;;  %s1850_s1 = inlined_call_operand.vmem [shape: bf16[256,128], index: 1, kind: input, shape index: {}]   ;;  %s1851_s2 = inlined_call_operand.vmem [shape: f32[1,128], index: 2, kind: input, shape index: {}]   ;;  %s1852_s3 = inlined_call_operand.vmem [shape: bf16[512,128], index: 3, kind: output, shape index: {}]  }
   0x1   :  { %s1679_s14 = smov 0  }
   0x2 LB: > { %s25_s15 = sadd.s32 1, %s1649_s13  ;;  %p1198_p0 = scmp.ge.s32.totalorder %s1653_s14, 1  ;;  %s1653_s14 = sphi %s1679_s14, %s13_s14   ;;  %s1649_s13 = sphi %s1677_s13, %s1854_s13   ;;  %s1645_s12 = sphi %s1675_s12, %s1853_s12  }
   0x3   : > { %p27_p1 = scmp.ge.s32.totalorder %s25_s15, 2  ;;  %p169_p2 = scmp.lt.s32.totalorder %s1653_s14, 3 }
   0x5   : > { %s1856_s15 = smov (%p27_p1, %s25_s15), 0  ;;  %p170_p3 = pnand %p1198_p0, %p169_p2 }
   0x6   : > { %s1199_s18 = sshll.u32 (!%p170_p3), %s1645_s12, 5 }
   0x7   : > { %173 = sbr.rel (%p170_p3) target bundleno = 309 (0x135), region = 32  ;;  %p205_p4 = scmp.lt.s32.totalorder (!%p170_p3), %s1199_s18, 63 }
   0xc   : > { %v1567_v0 = vld [vmem:[%s1850_s1 + $0x78] sm:$0xff]   ;;  %v1569_v2 = vld [vmem:[%s1850_s1 + $0x70] sm:$0xff]   ;;  %v1571_v4 = vld [vmem:[%s1850_s1 + $0x68] sm:$0xff]   ;;  %s1858_s18 = smov (!%p205_p4, %s1199_s18), 63 }
   0xd   : > { %v1568_v1 = vld [vmem:[%s1850_s1 + $0x38] sm:$0xff]   ;;  %1415 = vmatprep.subr.bf16.mxu0 %v1567_v0  ;;  %1527 = vmatprep.subr.bf16.mxu1 %v1567_v0  ;;  %v1570_v3 = vld [vmem:[%s1850_s1 + $0x30] sm:$0xff]   ;;  %v1572_v5 = vld [vmem:[%s1850_s1 + $0x28] sm:$0xff]   ;;  %s1287_s6 = sshll.u32 %s1858_s18, 3  ;;  %s1203_s5 = sshll.u32 %s1858_s18, 2 }
   0xe   : > { %1416 = vmatpush3.bf16.msra.mxu0 %v1568_v1  ;;  %1535 = vmatpush3.bf16.msra.mxu1 %v1568_v1  ;;  %v1573_v6 = vld [vmem:[%s1850_s1 + $0x60] sm:$0xff]   ;;  %v1575_v8 = vld [vmem:[%s1850_s1 + $0x58] sm:$0xff]   ;;  %s1726_s11 = scalar_lea.vmem %s1849_s0, %s1287_s6  ;;  %v1577_v10 = vld [vmem:[%s1850_s1 + $0x50] sm:$0xff]   ;;  %s1794_s8 = scalar_lea.vmem %s1852_s3, %s1203_s5 }
   0xf   : > { %1417 = vmatprep.subr.bf16.mxu0 %v1569_v2  ;;  %1528 = vmatprep.subr.bf16.mxu1 %v1569_v2  ;;  %v1574_v7 = vld [vmem:[%s1850_s1 + $0x20] sm:$0xff]   ;;  %v1576_v9 = vld [vmem:[%s1850_s1 + $0x18] sm:$0xff]   ;;  %v1578_v13 = vld [vmem:[%s1850_s1 + $0x10] sm:$0xff]  }
  0x10   : > { %v1585_v11 = vld [vmem:[%s1726_s11 + $0x4] ss:$8 sps:$4 sm:$0xff]   ;;  %v1583_v18 = vld [vmem:[%s1726_s11] ss:$8 sps:$4 sm:$0xff]   ;;  %v1589_v20 = vld [vmem:[%s1726_s11 + $0x14] ss:$8 sps:$4 sm:$0xff]  }
  0x11   : > { %v1588_v12 = vld [vmem:[%s1726_s11 + $0x84] ss:$8 sps:$4 sm:$0xff]   ;;  %648 = vmatprep.mubr.bf16.mxu0 %v1585_v11  ;;  %v1586_v19 = vld [vmem:[%s1726_s11 + $0x80] ss:$8 sps:$4 sm:$0xff]   ;;  %v1591_v21 = vld [vmem:[%s1726_s11 + $0x94] ss:$8 sps:$4 sm:$0xff]  }
  0x12   : > { %1418 = vmatpush3.bf16.msra.mxu0 %v1570_v3  ;;  %1536 = vmatpush3.bf16.msra.mxu1 %v1570_v3  ;;  %v1579_v14 = vld [vmem:[%s1850_s1 + $0x48] sm:$0xff]   ;;  %v1581_v16 = vld [vmem:[%s1850_s1 + $0x40] sm:$0xff]   ;;  %v1593_v22 = vld [vmem:[%s1726_s11 + $0x10] ss:$8 sps:$4 sm:$0xff]  }
  0x13   : > { %1419 = vmatprep.subr.bf16.mxu0 %v1571_v4  ;;  %1529 = vmatprep.subr.bf16.mxu1 %v1571_v4  ;;  %v1580_v15 = vld [vmem:[%s1850_s1 + $0x8] sm:$0xff]   ;;  %v1582_v17 = vld [vmem:[%s1850_s1] sm:$0xff]   ;;  %v1594_v23 = vld [vmem:[%s1726_s11 + $0x90] ss:$8 sps:$4 sm:$0xff]  }
  0x14   : > { %712 = vmatprep.mubr.bf16.mxu1 %v1588_v12  ;;  %v1595_v24 = vld [vmem:[%s1726_s11 + $0x24] ss:$8 sps:$4 sm:$0xff]   ;;  %v1599_v26 = vld [vmem:[%s1726_s11 + $0x20] ss:$8 sps:$4 sm:$0xff]   ;;  %v1601_v28 = vld [vmem:[%s1726_s11 + $0x34] ss:$8 sps:$4 sm:$0xff]  }
  0x15   : > { %v1597_v25 = vld [vmem:[%s1726_s11 + $0xa4] ss:$8 sps:$4 sm:$0xff]   ;;  %v1600_v27 = vld [vmem:[%s1726_s11 + $0xa0] ss:$8 sps:$4 sm:$0xff]   ;;  %v1603_v29 = vld [vmem:[%s1726_s11 + $0xb4] ss:$8 sps:$4 sm:$0xff]  }
  0x16   : > { %1420 = vmatpush3.bf16.msra.mxu0 %v1572_v5  ;;  %1537 = vmatpush3.bf16.msra.mxu1 %v1572_v5  ;;  %v1605_v30 = vld [vmem:[%s1726_s11 + $0x30] ss:$8 sps:$4 sm:$0xff]   ;;  %v1607_v32 = vld [vmem:[%s1726_s11 + $0x44] ss:$8 sps:$4 sm:$0xff]   ;;  %v1611_v34 = vld [vmem:[%s1726_s11 + $0x40] ss:$8 sps:$4 sm:$0xff]  }
  0x17   : > { %1421 = vmatprep.subr.bf16.mxu0 %v1573_v6  ;;  %1530 = vmatprep.subr.bf16.mxu1 %v1573_v6  ;;  %v1606_v31 = vld [vmem:[%s1726_s11 + $0xb0] ss:$8 sps:$4 sm:$0xff]   ;;  %v1609_v33 = vld [vmem:[%s1726_s11 + $0xc4] ss:$8 sps:$4 sm:$0xff]   ;;  %v1612_v35 = vld [vmem:[%s1726_s11 + $0xc0] ss:$8 sps:$4 sm:$0xff]  }
  0x18   : > { %v1613_v36 = vld [vmem:[%s1726_s11 + $0x54] ss:$8 sps:$4 sm:$0xff]   ;;  %v1617_v38 = vld [vmem:[%s1726_s11 + $0x50] ss:$8 sps:$4 sm:$0xff]   ;;  %v1619_v40 = vld [vmem:[%s1726_s11 + $0x64] ss:$8 sps:$4 sm:$0xff]  }
  0x19   : > { %v1615_v37 = vld [vmem:[%s1726_s11 + $0xd4] ss:$8 sps:$4 sm:$0xff]   ;;  %v1618_v39 = vld [vmem:[%s1726_s11 + $0xd0] ss:$8 sps:$4 sm:$0xff]   ;;  %v1621_v41 = vld [vmem:[%s1726_s11 + $0xe4] ss:$8 sps:$4 sm:$0xff]  }
  0x1a   : > { %1422 = vmatpush3.bf16.msra.mxu0 %v1574_v7  ;;  %1538 = vmatpush3.bf16.msra.mxu1 %v1574_v7  ;;  %v1623_v42 = vld [vmem:[%s1726_s11 + $0x60] ss:$8 sps:$4 sm:$0xff]   ;;  %v1625_v44 = vld [vmem:[%s1726_s11 + $0x74] ss:$8 sps:$4 sm:$0xff]   ;;  %v1629_v46 = vld [vmem:[%s1726_s11 + $0x70] ss:$8 sps:$4 sm:$0xff]  }
  0x1b   : > { %1423 = vmatprep.subr.bf16.mxu0 %v1575_v8  ;;  %1531 = vmatprep.subr.bf16.mxu1 %v1575_v8  ;;  %v1624_v43 = vld [vmem:[%s1726_s11 + $0xe0] ss:$8 sps:$4 sm:$0xff]   ;;  %v1627_v45 = vld [vmem:[%s1726_s11 + $0xf4] ss:$8 sps:$4 sm:$0xff]   ;;  %v1630_v47 = vld [vmem:[%s1726_s11 + $0xf0] ss:$8 sps:$4 sm:$0xff]  }
  0x1c   : > { %v1784_v53 = vld [vmem:[%s1851_s2] ss:$0 sm:$0xff] }
  0x1e   : > { %1424 = vmatpush3.bf16.msra.mxu0 %v1576_v9  ;;  %1539 = vmatpush3.bf16.msra.mxu1 %v1576_v9 }
  0x1f   : > { %1425 = vmatprep.subr.bf16.mxu0 %v1577_v10  ;;  %1532 = vmatprep.subr.bf16.mxu1 %v1577_v10 }
  0x22   : > { %1426 = vmatpush3.bf16.msra.mxu0 %v1578_v13  ;;  %1540 = vmatpush3.bf16.msra.mxu1 %v1578_v13 }
  0x23   : > { %1427 = vmatprep.subr.bf16.mxu0 %v1579_v14  ;;  %1533 = vmatprep.subr.bf16.mxu1 %v1579_v14 }
  0x26   : > { %1428 = vmatpush3.bf16.msra.mxu0 %v1580_v15  ;;  %1541 = vmatpush3.bf16.msra.mxu1 %v1580_v15 }
  0x27   : > { %1429 = vmatprep.subr.bf16.mxu0 %v1581_v16  ;;  %1534 = vmatprep.subr.bf16.mxu1 %v1581_v16 }
  0x2a   : > { %1430 = vmatpush3.bf16.msra.mxu0 %v1582_v17  ;;  %1542 = vmatpush3.bf16.msra.mxu1 %v1582_v17 }
  0x2d   : > { %649 = vmatmul.mubr.bf16.vlgmr.msra.gmra.mxu0 %v1583_v18  ;;  %713 = vmatmul.mubr.bf16.vlgmr.msra.gmra.mxu1 %v1586_v19 }
  0x2e   : > { %656 = vmatprep.mubr.bf16.mxu0 %v1589_v20  ;;  %720 = vmatprep.mubr.bf16.mxu1 %v1591_v21 }
  0x35   : > { %657 = vmatmul.mubr.bf16.gmra.mxu0 %v1593_v22  ;;  %721 = vmatmul.mubr.bf16.gmra.mxu1 %v1594_v23 }
  0x36   : > { %664 = vmatprep.mubr.bf16.mxu0 %v1595_v24  ;;  %728 = vmatprep.mubr.bf16.mxu1 %v1597_v25 }
  0x3d   : > { %665 = vmatmul.mubr.bf16.gmra.mxu0 %v1599_v26  ;;  %729 = vmatmul.mubr.bf16.gmra.mxu1 %v1600_v27 }
  0x3e   : > { %672 = vmatprep.mubr.bf16.mxu0 %v1601_v28  ;;  %736 = vmatprep.mubr.bf16.mxu1 %v1603_v29 }
  0x45   : > { %673 = vmatmul.mubr.bf16.gmra.mxu0 %v1605_v30  ;;  %737 = vmatmul.mubr.bf16.gmra.mxu1 %v1606_v31 }
  0x46   : > { %680 = vmatprep.mubr.bf16.mxu0 %v1607_v32  ;;  %744 = vmatprep.mubr.bf16.mxu1 %v1609_v33 }
  0x4d   : > { %681 = vmatmul.mubr.bf16.gmra.mxu0 %v1611_v34  ;;  %745 = vmatmul.mubr.bf16.gmra.mxu1 %v1612_v35 }
  0x4e   : > { %688 = vmatprep.mubr.bf16.mxu0 %v1613_v36  ;;  %752 = vmatprep.mubr.bf16.mxu1 %v1615_v37 }
  0x55   : > { %689 = vmatmul.mubr.bf16.gmra.mxu0 %v1617_v38  ;;  %753 = vmatmul.mubr.bf16.gmra.mxu1 %v1618_v39 }
  0x56   : > { %696 = vmatprep.mubr.bf16.mxu0 %v1619_v40  ;;  %760 = vmatprep.mubr.bf16.mxu1 %v1621_v41 }
  0x5d   : > { %697 = vmatmul.mubr.bf16.gmra.mxu0 %v1623_v42  ;;  %761 = vmatmul.mubr.bf16.gmra.mxu1 %v1624_v43 }
  0x5e   : > { %704 = vmatprep.mubr.bf16.mxu0 %v1625_v44  ;;  %768 = vmatprep.mubr.bf16.mxu1 %v1627_v45 }
  0x65   : > { %705 = vmatmul.mubr.bf16.gmra.mxu0 %v1629_v46  ;;  %769 = vmatmul.mubr.bf16.gmra.mxu1 %v1630_v47 }
  0xed   : > { %v1431_v48 = vpop.f32.mrf.mxu0  ;;  %v1479_v49 = vpop.f32.mrf.mxu1 }
  0xef   : > { %v1432_v50 = vpop.f32.mrf.mxu0  ;;  %v1480_v51 = vpop.f32.mrf.mxu1 }
  0xf0   : > { %v1433_v52 = vadd.f32 %v1432_v50, %v1431_v48  ;;  %v1481_v54 = vadd.f32 %v1480_v51, %v1479_v49 }
  0xf1   : > { %v1434_v55 = vpop.f32.mrf.mxu0  ;;  %v1482_v56 = vpop.f32.mrf.mxu1 }
  0xf2   : > { %v883_v57 = vadd.f32 %v1433_v52, %v1784_v53  ;;  %v899_v58 = vadd.f32 %v1481_v54, %v1784_v53 }
  0xf3   : > { %v1435_v59 = vpop.f32.mrf.mxu0  ;;  %v1483_v60 = vpop.f32.mrf.mxu1 }
  0xf4   : > { %v1436_v61 = vadd.f32 %v1435_v59, %v1434_v55  ;;  %v1484_v62 = vadd.f32 %v1483_v60, %v1482_v56  ;;  %v915_v3 = vmax.f32 %v883_v57, 0.0  ;;  %v931_v4 = vmax.f32 %v899_v58, 0.0 }
  0xf5   : > { %v1437_v63 = vpop.f32.mrf.mxu0  ;;  %v1485_v0 = vpop.f32.mrf.mxu1 }
  0xf6   : > { %v884_v1 = vadd.f32 %v1436_v61, %v1784_v53  ;;  %v900_v2 = vadd.f32 %v1484_v62, %v1784_v53 }
  0xf7   : > { %v1438_v5 = vpop.f32.mrf.mxu0  ;;  %v1486_v6 = vpop.f32.mrf.mxu1 }
  0xf8   : > { %v916_v7 = vmax.f32 %v884_v1, 0.0  ;;  %v932_v8 = vmax.f32 %v900_v2, 0.0  ;;  %v1439_v9 = vadd.f32 %v1438_v5, %v1437_v63  ;;  %v1487_v10 = vadd.f32 %v1486_v6, %v1485_v0 }
  0xf9   : > { %v1440_v11 = vpop.f32.mrf.mxu0  ;;  %v1488_v12 = vpop.f32.mrf.mxu1 }
  0xfa   : > { %v1323_v13 = vpack.c.bf16 %v916_v7, %v915_v3  ;;  %v1363_v14 = vpack.c.bf16 %v932_v8, %v931_v4  ;;  %v885_v15 = vadd.f32 %v1439_v9, %v1784_v53  ;;  %v901_v16 = vadd.f32 %v1487_v10, %v1784_v53 }
  0xfb   : > { %v1441_v17 = vpop.f32.mrf.mxu0  ;;  %v1489_v18 = vpop.f32.mrf.mxu1 }
  0xfc   : > { %1324 = vst [vmem:[%s1794_s8] sm:$0xff] %v1323_v13   ;;  %1407 = vst [vmem:[%s1794_s8 + $0x40] sm:$0xff] %v1363_v14   ;;  %v1442_v19 = vadd.f32 %v1441_v17, %v1440_v11  ;;  %v1490_v20 = vadd.f32 %v1489_v18, %v1488_v12  ;;  %v917_v25 = vmax.f32 %v885_v15, 0.0  ;;  %v933_v26 = vmax.f32 %v901_v16, 0.0 }
  0xfd   : > { %v1443_v21 = vpop.f32.mrf.mxu0  ;;  %v1491_v22 = vpop.f32.mrf.mxu1 }
  0xfe   : > { %v886_v23 = vadd.f32 %v1442_v19, %v1784_v53  ;;  %v902_v24 = vadd.f32 %v1490_v20, %v1784_v53 }
  0xff   : > { %v1444_v27 = vpop.f32.mrf.mxu0  ;;  %v1492_v28 = vpop.f32.mrf.mxu1 }
 0x100   : > { %v918_v29 = vmax.f32 %v886_v23, 0.0  ;;  %v934_v30 = vmax.f32 %v902_v24, 0.0  ;;  %v1445_v31 = vadd.f32 %v1444_v27, %v1443_v21  ;;  %v1493_v32 = vadd.f32 %v1492_v28, %v1491_v22 }
 0x101   : > { %v1446_v33 = vpop.f32.mrf.mxu0  ;;  %v1494_v34 = vpop.f32.mrf.mxu1 }
 0x102   : > { %v1328_v35 = vpack.c.bf16 %v918_v29, %v917_v25  ;;  %v1368_v36 = vpack.c.bf16 %v934_v30, %v933_v26  ;;  %v887_v37 = vadd.f32 %v1445_v31, %v1784_v53  ;;  %v903_v38 = vadd.f32 %v1493_v32, %v1784_v53 }
 0x103   : > { %v1447_v39 = vpop.f32.mrf.mxu0  ;;  %v1495_v40 = vpop.f32.mrf.mxu1 }
 0x104   : > { %1400 = vst [vmem:[%s1794_s8 + $0x8] sm:$0xff] %v1328_v35   ;;  %1408 = vst [vmem:[%s1794_s8 + $0x48] sm:$0xff] %v1368_v36   ;;  %v1448_v41 = vadd.f32 %v1447_v39, %v1446_v33  ;;  %v1496_v42 = vadd.f32 %v1495_v40, %v1494_v34  ;;  %v919_v47 = vmax.f32 %v887_v37, 0.0  ;;  %v935_v48 = vmax.f32 %v903_v38, 0.0 }
 0x105   : > { %v1449_v43 = vpop.f32.mrf.mxu0  ;;  %v1497_v44 = vpop.f32.mrf.mxu1 }
 0x106   : > { %v888_v45 = vadd.f32 %v1448_v41, %v1784_v53  ;;  %v904_v46 = vadd.f32 %v1496_v42, %v1784_v53 }
 0x107   : > { %v1450_v49 = vpop.f32.mrf.mxu0  ;;  %v1498_v50 = vpop.f32.mrf.mxu1 }
 0x108   : > { %v920_v51 = vmax.f32 %v888_v45, 0.0  ;;  %v936_v52 = vmax.f32 %v904_v46, 0.0  ;;  %v1451_v54 = vadd.f32 %v1450_v49, %v1449_v43  ;;  %v1499_v55 = vadd.f32 %v1498_v50, %v1497_v44 }
 0x109   : > { %v1452_v56 = vpop.f32.mrf.mxu0  ;;  %v1500_v57 = vpop.f32.mrf.mxu1 }
 0x10a   : > { %v1333_v58 = vpack.c.bf16 %v920_v51, %v919_v47  ;;  %v1373_v59 = vpack.c.bf16 %v936_v52, %v935_v48  ;;  %v889_v60 = vadd.f32 %v1451_v54, %v1784_v53  ;;  %v905_v61 = vadd.f32 %v1499_v55, %v1784_v53 }
 0x10b   : > { %v1453_v62 = vpop.f32.mrf.mxu0  ;;  %v1501_v63 = vpop.f32.mrf.mxu1 }
 0x10c   : > { %1401 = vst [vmem:[%s1794_s8 + $0x10] sm:$0xff] %v1333_v58   ;;  %1409 = vst [vmem:[%s1794_s8 + $0x50] sm:$0xff] %v1373_v59   ;;  %v1454_v0 = vadd.f32 %v1453_v62, %v1452_v56  ;;  %v1502_v1 = vadd.f32 %v1501_v63, %v1500_v57  ;;  %v921_v6 = vmax.f32 %v889_v60, 0.0  ;;  %v937_v7 = vmax.f32 %v905_v61, 0.0 }
 0x10d   : > { %v1455_v2 = vpop.f32.mrf.mxu0  ;;  %v1503_v3 = vpop.f32.mrf.mxu1 }
 0x10e   : > { %v890_v4 = vadd.f32 %v1454_v0, %v1784_v53  ;;  %v906_v5 = vadd.f32 %v1502_v1, %v1784_v53 }
 0x10f   : > { %v1456_v8 = vpop.f32.mrf.mxu0  ;;  %v1504_v9 = vpop.f32.mrf.mxu1 }
 0x110   : > { %v922_v10 = vmax.f32 %v890_v4, 0.0  ;;  %v938_v11 = vmax.f32 %v906_v5, 0.0  ;;  %v1457_v12 = vadd.f32 %v1456_v8, %v1455_v2  ;;  %v1505_v13 = vadd.f32 %v1504_v9, %v1503_v3 }
 0x111   : > { %v1458_v14 = vpop.f32.mrf.mxu0  ;;  %v1506_v15 = vpop.f32.mrf.mxu1 }
 0x112   : > { %v1338_v16 = vpack.c.bf16 %v922_v10, %v921_v6  ;;  %v1378_v17 = vpack.c.bf16 %v938_v11, %v937_v7  ;;  %v891_v18 = vadd.f32 %v1457_v12, %v1784_v53  ;;  %v907_v19 = vadd.f32 %v1505_v13, %v1784_v53 }
 0x113   : > { %v1459_v20 = vpop.f32.mrf.mxu0  ;;  %v1507_v21 = vpop.f32.mrf.mxu1 }
 0x114   : > { %1402 = vst [vmem:[%s1794_s8 + $0x18] sm:$0xff] %v1338_v16   ;;  %1410 = vst [vmem:[%s1794_s8 + $0x58] sm:$0xff] %v1378_v17   ;;  %v1460_v22 = vadd.f32 %v1459_v20, %v1458_v14  ;;  %v1508_v23 = vadd.f32 %v1507_v21, %v1506_v15  ;;  %v923_v28 = vmax.f32 %v891_v18, 0.0  ;;  %v939_v29 = vmax.f32 %v907_v19, 0.0 }
 0x115   : > { %v1461_v24 = vpop.f32.mrf.mxu0  ;;  %v1509_v25 = vpop.f32.mrf.mxu1 }
 0x116   : > { %v892_v26 = vadd.f32 %v1460_v22, %v1784_v53  ;;  %v908_v27 = vadd.f32 %v1508_v23, %v1784_v53 }
 0x117   : > { %v1462_v30 = vpop.f32.mrf.mxu0  ;;  %v1510_v31 = vpop.f32.mrf.mxu1 }
 0x118   : > { %v924_v32 = vmax.f32 %v892_v26, 0.0  ;;  %v940_v33 = vmax.f32 %v908_v27, 0.0  ;;  %v1463_v34 = vadd.f32 %v1462_v30, %v1461_v24  ;;  %v1511_v35 = vadd.f32 %v1510_v31, %v1509_v25 }
 0x119   : > { %v1464_v36 = vpop.f32.mrf.mxu0  ;;  %v1512_v37 = vpop.f32.mrf.mxu1 }
 0x11a   : > { %v1343_v38 = vpack.c.bf16 %v924_v32, %v923_v28  ;;  %v1383_v39 = vpack.c.bf16 %v940_v33, %v939_v29  ;;  %v893_v40 = vadd.f32 %v1463_v34, %v1784_v53  ;;  %v909_v41 = vadd.f32 %v1511_v35, %v1784_v53 }
 0x11b   : > { %v1465_v42 = vpop.f32.mrf.mxu0  ;;  %v1513_v43 = vpop.f32.mrf.mxu1 }
 0x11c   : > { %1403 = vst [vmem:[%s1794_s8 + $0x20] sm:$0xff] %v1343_v38   ;;  %1411 = vst [vmem:[%s1794_s8 + $0x60] sm:$0xff] %v1383_v39   ;;  %v1466_v44 = vadd.f32 %v1465_v42, %v1464_v36  ;;  %v1514_v45 = vadd.f32 %v1513_v43, %v1512_v37  ;;  %v925_v50 = vmax.f32 %v893_v40, 0.0  ;;  %v941_v51 = vmax.f32 %v909_v41, 0.0 }
 0x11d   : > { %v1467_v46 = vpop.f32.mrf.mxu0  ;;  %v1515_v47 = vpop.f32.mrf.mxu1 }
 0x11e   : > { %v894_v48 = vadd.f32 %v1466_v44, %v1784_v53  ;;  %v910_v49 = vadd.f32 %v1514_v45, %v1784_v53 }
 0x11f   : > { %v1468_v52 = vpop.f32.mrf.mxu0  ;;  %v1516_v54 = vpop.f32.mrf.mxu1 }
 0x120   : > { %v926_v55 = vmax.f32 %v894_v48, 0.0  ;;  %v942_v56 = vmax.f32 %v910_v49, 0.0  ;;  %v1469_v57 = vadd.f32 %v1468_v52, %v1467_v46  ;;  %v1517_v58 = vadd.f32 %v1516_v54, %v1515_v47 }
 0x121   : > { %v1470_v59 = vpop.f32.mrf.mxu0  ;;  %v1518_v60 = vpop.f32.mrf.mxu1 }
 0x122   : > { %v1348_v61 = vpack.c.bf16 %v926_v55, %v925_v50  ;;  %v1388_v62 = vpack.c.bf16 %v942_v56, %v941_v51  ;;  %v895_v63 = vadd.f32 %v1469_v57, %v1784_v53  ;;  %v911_v0 = vadd.f32 %v1517_v58, %v1784_v53 }
 0x123   : > { %v1471_v1 = vpop.f32.mrf.mxu0  ;;  %v1519_v2 = vpop.f32.mrf.mxu1 }
 0x124   : > { %1404 = vst [vmem:[%s1794_s8 + $0x28] sm:$0xff] %v1348_v61   ;;  %1412 = vst [vmem:[%s1794_s8 + $0x68] sm:$0xff] %v1388_v62   ;;  %v1472_v3 = vadd.f32 %v1471_v1, %v1470_v59  ;;  %v1520_v4 = vadd.f32 %v1519_v2, %v1518_v60  ;;  %v927_v9 = vmax.f32 %v895_v63, 0.0  ;;  %v943_v10 = vmax.f32 %v911_v0, 0.0 }
 0x125   : > { %v1473_v5 = vpop.f32.mrf.mxu0  ;;  %v1521_v6 = vpop.f32.mrf.mxu1 }
 0x126   : > { %v896_v7 = vadd.f32 %v1472_v3, %v1784_v53  ;;  %v912_v8 = vadd.f32 %v1520_v4, %v1784_v53 }
 0x127   : > { %v1474_v11 = vpop.f32.mrf.mxu0  ;;  %v1522_v12 = vpop.f32.mrf.mxu1 }
 0x128   : > { %v928_v13 = vmax.f32 %v896_v7, 0.0  ;;  %v944_v14 = vmax.f32 %v912_v8, 0.0  ;;  %v1475_v15 = vadd.f32 %v1474_v11, %v1473_v5  ;;  %v1523_v16 = vadd.f32 %v1522_v12, %v1521_v6 }
 0x129   : > { %v1476_v17 = vpop.f32.mrf.mxu0  ;;  %v1524_v18 = vpop.f32.mrf.mxu1 }
 0x12a   : > { %v1353_v19 = vpack.c.bf16 %v928_v13, %v927_v9  ;;  %v1393_v20 = vpack.c.bf16 %v944_v14, %v943_v10  ;;  %v897_v23 = vadd.f32 %v1475_v15, %v1784_v53  ;;  %v913_v24 = vadd.f32 %v1523_v16, %v1784_v53 }
 0x12b   : > { %v1477_v21 = vpop.f32.mrf.mxu0  ;;  %v1525_v22 = vpop.f32.mrf.mxu1 }
 0x12c   : > { %1405 = vst [vmem:[%s1794_s8 + $0x30] sm:$0xff] %v1353_v19   ;;  %1413 = vst [vmem:[%s1794_s8 + $0x70] sm:$0xff] %v1393_v20   ;;  %v1478_v25 = vadd.f32 %v1477_v21, %v1476_v17  ;;  %v1526_v26 = vadd.f32 %v1525_v22, %v1524_v18  ;;  %v929_v29 = vmax.f32 %v897_v23, 0.0  ;;  %v945_v30 = vmax.f32 %v913_v24, 0.0 }
 0x12e   : > { %v898_v27 = vadd.f32 %v1478_v25, %v1784_v53  ;;  %v914_v28 = vadd.f32 %v1526_v26, %v1784_v53 }
 0x130   : > { %v930_v31 = vmax.f32 %v898_v27, 0.0  ;;  %v946_v32 = vmax.f32 %v914_v28, 0.0 }
 0x132   : > { %v1358_v33 = vpack.c.bf16 %v930_v31, %v929_v29  ;;  %v1398_v34 = vpack.c.bf16 %v946_v32, %v945_v30 }
 0x134   : > { %1406 = vst [vmem:[%s1794_s8 + $0x38] sm:$0xff] %v1358_v33   ;;  %1414 = vst [vmem:[%s1794_s8 + $0x78] sm:$0xff] %v1398_v34  }
 0x135 PF: > { %s13_s14 = sadd.s32 1, %s1653_s14   ;;  %s1853_s12 = smov %s1649_s13 }
 0x136   : > { %p10_p5 = scmp.ge.s32.totalorder %s13_s14, 4   ;;  %s1854_s13 = smov %s1856_s15 }
 0x138   :  { %12 = sbr.rel (!%p10_p5) target bundleno = 2 (0x2), region = 73 }

// kernel: augmented_nature_cnn_forward.5
= control target key start
LH: loop header
LB: loop body
LE: loop exit
PB: predicated region body
PF: predicated region fallthrough
CT: control target
= control target key end

     0   :  { %s1325_s1 = inlined_call_operand.vmem [shape: bf16[512,128], index: 1, kind: input, shape index: {}]   ;;  %s1326_s0 = inlined_call_operand.vmem [shape: bf16[104,512], index: 0, kind: input, shape index: {}]   ;;  %s1327_s2 = inlined_call_operand.vmem [shape: f32[1,128], index: 2, kind: input, shape index: {}]   ;;  %s1328_s3 = inlined_call_operand.vmem [shape: bf16[104,128], index: 3, kind: output, shape index: {}]  }
   0x1   :  { %v1020_v0 = vld [vmem:[%s1325_s1 + $0x78] sm:$0xff]   ;;  %v1024_v4 = vld [vmem:[%s1325_s1 + $0x70] sm:$0xff]   ;;  %v1028_v8 = vld [vmem:[%s1325_s1 + $0x68] sm:$0xff]  }
   0x2   :  { %v1021_v1 = vld [vmem:[%s1325_s1 + $0xf8] sm:$0xff]   ;;  %904 = vmatprep.subr.bf16.mxu0 %v1020_v0  ;;  %v1025_v5 = vld [vmem:[%s1325_s1 + $0xf0] sm:$0xff]   ;;  %v1029_v9 = vld [vmem:[%s1325_s1 + $0xe8] sm:$0xff]  }
   0x3   :  { %v1022_v2 = vld [vmem:[%s1325_s1 + $0x38] sm:$0xff]   ;;  %962 = vmatprep.subr.bf16.mxu1 %v1021_v1  ;;  %v1026_v6 = vld [vmem:[%s1325_s1 + $0x30] sm:$0xff]   ;;  %v1030_v10 = vld [vmem:[%s1325_s1 + $0x28] sm:$0xff]  }
   0x4   :  { %v1023_v3 = vld [vmem:[%s1325_s1 + $0xb8] sm:$0xff]   ;;  %905 = vmatpush3.bf16.msra.mxu0 %v1022_v2  ;;  %v1027_v7 = vld [vmem:[%s1325_s1 + $0xb0] sm:$0xff]   ;;  %v1031_v11 = vld [vmem:[%s1325_s1 + $0xa8] sm:$0xff]  }
   0x5   :  { %963 = vmatpush3.bf16.msra.mxu1 %v1023_v3  ;;  %906 = vmatprep.subr.bf16.mxu0 %v1024_v4  ;;  %v1032_v12 = vld [vmem:[%s1325_s1 + $0x60] sm:$0xff]   ;;  %v1036_v16 = vld [vmem:[%s1325_s1 + $0x58] sm:$0xff]   ;;  %v1040_v20 = vld [vmem:[%s1325_s1 + $0x50] sm:$0xff]  }
   0x6   :  { %964 = vmatprep.subr.bf16.mxu1 %v1025_v5  ;;  %v1033_v13 = vld [vmem:[%s1325_s1 + $0xe0] sm:$0xff]   ;;  %v1037_v17 = vld [vmem:[%s1325_s1 + $0xd8] sm:$0xff]   ;;  %v1041_v21 = vld [vmem:[%s1325_s1 + $0xd0] sm:$0xff]  }
   0x7   :  { %v1034_v14 = vld [vmem:[%s1325_s1 + $0x20] sm:$0xff]   ;;  %v1038_v18 = vld [vmem:[%s1325_s1 + $0x18] sm:$0xff]   ;;  %v1042_v22 = vld [vmem:[%s1325_s1 + $0x10] sm:$0xff]  }
   0x8   :  { %907 = vmatpush3.bf16.msra.mxu0 %v1026_v6  ;;  %v1035_v15 = vld [vmem:[%s1325_s1 + $0xa0] sm:$0xff]   ;;  %v1039_v19 = vld [vmem:[%s1325_s1 + $0x98] sm:$0xff]   ;;  %v1043_v23 = vld [vmem:[%s1325_s1 + $0x90] sm:$0xff]  }
   0x9   :  { %965 = vmatpush3.bf16.msra.mxu1 %v1027_v7  ;;  %908 = vmatprep.subr.bf16.mxu0 %v1028_v8  ;;  %v1044_v24 = vld [vmem:[%s1325_s1 + $0x48] sm:$0xff]   ;;  %v1048_v28 = vld [vmem:[%s1325_s1 + $0x40] sm:$0xff]  }
   0xa   :  { %966 = vmatprep.subr.bf16.mxu1 %v1029_v9  ;;  %v1045_v25 = vld [vmem:[%s1325_s1 + $0xc8] sm:$0xff]   ;;  %v1049_v29 = vld [vmem:[%s1325_s1 + $0xc0] sm:$0xff]  }
   0xb   :  { %v1046_v26 = vld [vmem:[%s1325_s1 + $0x8] sm:$0xff]   ;;  %v1050_v30 = vld [vmem:[%s1325_s1] sm:$0xff]  }
   0xc   :  { %909 = vmatpush3.bf16.msra.mxu0 %v1030_v10  ;;  %v1047_v27 = vld [vmem:[%s1325_s1 + $0x88] sm:$0xff]   ;;  %v1051_v31 = vld [vmem:[%s1325_s1 + $0x80] sm:$0xff]  }
   0xd   :  { %967 = vmatpush3.bf16.msra.mxu1 %v1031_v11  ;;  %910 = vmatprep.subr.bf16.mxu0 %v1032_v12  ;;  %v1052_v32 = vld [vmem:[%s1326_s0] ss:$16 sps:$4 sm:$0xff]   ;;  %v1054_v33 = vld [vmem:[%s1326_s0 + $0x4] ss:$16 sps:$4 sm:$0xff]   ;;  %v1055_v34 = vld [vmem:[%s1326_s0 + $0x8] ss:$16 sps:$4 sm:$0xff]  }
   0xe   :  { %968 = vmatprep.subr.bf16.mxu1 %v1033_v13  ;;  %v1057_v35 = vld [vmem:[%s1326_s0 + $0xc] ss:$16 sps:$4 sm:$0xff]   ;;  %493 = vmatprep.mubr.bf16.mxu0 %v1054_v33  ;;  %v1058_v36 = vld [vmem:[%s1326_s0 + $0x24] ss:$16 sps:$4 sm:$0xff]   ;;  %v1062_v38 = vld [vmem:[%s1326_s0 + $0x20] ss:$16 sps:$4 sm:$0xff]  }
   0xf   :  { %581 = vmatprep.mubr.bf16.mxu1 %v1057_v35  ;;  %v1060_v37 = vld [vmem:[%s1326_s0 + $0x2c] ss:$16 sps:$4 sm:$0xff]   ;;  %v1063_v39 = vld [vmem:[%s1326_s0 + $0x28] ss:$16 sps:$4 sm:$0xff]   ;;  %v1064_v40 = vld [vmem:[%s1326_s0 + $0x44] ss:$16 sps:$4 sm:$0xff]  }
  0x10   :  { %911 = vmatpush3.bf16.msra.mxu0 %v1034_v14  ;;  %v1066_v41 = vld [vmem:[%s1326_s0 + $0x4c] ss:$16 sps:$4 sm:$0xff]   ;;  %v1068_v42 = vld [vmem:[%s1326_s0 + $0x40] ss:$16 sps:$4 sm:$0xff]   ;;  %v1069_v43 = vld [vmem:[%s1326_s0 + $0x48] ss:$16 sps:$4 sm:$0xff]  }
  0x11   :  { %969 = vmatpush3.bf16.msra.mxu1 %v1035_v15  ;;  %912 = vmatprep.subr.bf16.mxu0 %v1036_v16  ;;  %v1070_v44 = vld [vmem:[%s1326_s0 + $0x64] ss:$16 sps:$4 sm:$0xff]   ;;  %v1072_v45 = vld [vmem:[%s1326_s0 + $0x6c] ss:$16 sps:$4 sm:$0xff]   ;;  %v1074_v46 = vld [vmem:[%s1326_s0 + $0x60] ss:$16 sps:$4 sm:$0xff]  }
  0x12   :  { %970 = vmatprep.subr.bf16.mxu1 %v1037_v17  ;;  %v1075_v47 = vld [vmem:[%s1326_s0 + $0x68] ss:$16 sps:$4 sm:$0xff]   ;;  %v1076_v48 = vld [vmem:[%s1326_s0 + $0x84] ss:$16 sps:$4 sm:$0xff]   ;;  %v1078_v49 = vld [vmem:[%s1326_s0 + $0x8c] ss:$16 sps:$4 sm:$0xff]  }
  0x13   :  { %v1080_v50 = vld [vmem:[%s1326_s0 + $0x80] ss:$16 sps:$4 sm:$0xff]   ;;  %v1081_v51 = vld [vmem:[%s1326_s0 + $0x88] ss:$16 sps:$4 sm:$0xff]   ;;  %v1082_v52 = vld [vmem:[%s1326_s0 + $0xa4] ss:$16 sps:$4 sm:$0xff]  }
  0x14   :  { %913 = vmatpush3.bf16.msra.mxu0 %v1038_v18  ;;  %v1084_v53 = vld [vmem:[%s1326_s0 + $0xac] ss:$16 sps:$4 sm:$0xff]   ;;  %v69_v54 = vld [vmem:[%s1326_s0 + $0xc0] sm:$0xff]  ;;  %v1087_v57 = vld [vmem:[%s1326_s0 + $0xa8] ss:$16 sps:$4 sm:$0xff]  }
  0x15   :  { %971 = vmatpush3.bf16.msra.mxu1 %v1039_v19  ;;  %914 = vmatprep.subr.bf16.mxu0 %v1040_v20  ;;  %v70_v55 = vld [vmem:[%s1326_s0 + $0xc8] sm:$0xff]  ;;  %v1086_v56 = vld [vmem:[%s1326_s0 + $0xa0] ss:$16 sps:$4 sm:$0xff]   ;;  %v807_v58 = vcombine.high %v69_v54, %v69_v54  ;;  %v806_v60 = vcombine.low %v69_v54, %v69_v54 }
  0x16   :  { %972 = vmatprep.subr.bf16.mxu1 %v1041_v21  ;;  %v809_v59 = vcombine.high %v70_v55, %v70_v55  ;;  %v808_v61 = vcombine.low %v70_v55, %v70_v55  ;;  %v1289_v8 = vld [vmem:[%s1327_s2] ss:$0 sm:$0xff] }
  0x18   :  { %915 = vmatpush3.bf16.msra.mxu0 %v1042_v22 }
  0x19   :  { %973 = vmatpush3.bf16.msra.mxu1 %v1043_v23  ;;  %916 = vmatprep.subr.bf16.mxu0 %v1044_v24 }
  0x1a   :  { %974 = vmatprep.subr.bf16.mxu1 %v1045_v25 }
  0x1c   :  { %917 = vmatpush3.bf16.msra.mxu0 %v1046_v26 }
  0x1d   :  { %975 = vmatpush3.bf16.msra.mxu1 %v1047_v27  ;;  %918 = vmatprep.subr.bf16.mxu0 %v1048_v28 }
  0x1e   :  { %976 = vmatprep.subr.bf16.mxu1 %v1049_v29 }
  0x20   :  { %919 = vmatpush3.bf16.msra.mxu0 %v1050_v30 }
  0x21   :  { %977 = vmatpush3.bf16.msra.mxu1 %v1051_v31 }
  0x23   :  { %494 = vmatmul.mubr.bf16.vlgmr.msra.gmra.mxu0 %v1052_v32 }
  0x24   :  { %582 = vmatmul.mubr.bf16.vlgmr.msra.gmra.mxu1 %v1055_v34  ;;  %501 = vmatprep.mubr.bf16.mxu0 %v1058_v36 }
  0x25   :  { %589 = vmatprep.mubr.bf16.mxu1 %v1060_v37 }
  0x2b   :  { %502 = vmatmul.mubr.bf16.gmra.mxu0 %v1062_v38 }
  0x2c   :  { %590 = vmatmul.mubr.bf16.gmra.mxu1 %v1063_v39  ;;  %509 = vmatprep.mubr.bf16.mxu0 %v1064_v40 }
  0x2d   :  { %597 = vmatprep.mubr.bf16.mxu1 %v1066_v41 }
  0x33   :  { %510 = vmatmul.mubr.bf16.gmra.mxu0 %v1068_v42 }
  0x34   :  { %598 = vmatmul.mubr.bf16.gmra.mxu1 %v1069_v43  ;;  %517 = vmatprep.mubr.bf16.mxu0 %v1070_v44 }
  0x35   :  { %605 = vmatprep.mubr.bf16.mxu1 %v1072_v45 }
  0x3b   :  { %518 = vmatmul.mubr.bf16.gmra.mxu0 %v1074_v46 }
  0x3c   :  { %606 = vmatmul.mubr.bf16.gmra.mxu1 %v1075_v47  ;;  %525 = vmatprep.mubr.bf16.mxu0 %v1076_v48 }
  0x3d   :  { %613 = vmatprep.mubr.bf16.mxu1 %v1078_v49 }
  0x43   :  { %526 = vmatmul.mubr.bf16.gmra.mxu0 %v1080_v50 }
  0x44   :  { %614 = vmatmul.mubr.bf16.gmra.mxu1 %v1081_v51  ;;  %533 = vmatprep.mubr.bf16.mxu0 %v1082_v52 }
  0x45   :  { %621 = vmatprep.mubr.bf16.mxu1 %v1084_v53 }
  0x4b   :  { %534 = vmatmul.mubr.bf16.gmra.mxu0 %v1086_v56 }
  0x4c   :  { %622 = vmatmul.mubr.bf16.gmra.mxu1 %v1087_v57  ;;  %541 = vmatprep.mubr.bf16.mxu0 %v807_v58 }
  0x4d   :  { %629 = vmatprep.mubr.bf16.mxu1 %v809_v59 }
  0x53   :  { %542 = vmatmul.mubr.bf16.gmra.mxu0 %v806_v60 }
  0x54   :  { %630 = vmatmul.mubr.bf16.gmra.mxu1 %v808_v61 }
  0xe3   :  { %v920_v62 = vpop.f32.mrf.mxu0 }
  0xe4   :  { %v978_v63 = vpop.f32.mrf.mxu1 }
  0xe5   :  { %v921_v0 = vpop.f32.mrf.mxu0 }
  0xe6   :  { %v922_v1 = vadd.f32 %v921_v0, %v920_v62  ;;  %v979_v2 = vpop.f32.mrf.mxu1 }
  0xe7   :  { %v980_v3 = vadd.f32 %v979_v2, %v978_v63  ;;  %v923_v4 = vpop.f32.mrf.mxu0 }
  0xe8   :  { %v981_v5 = vpop.f32.mrf.mxu1 }
  0xe9   :  { %v584_v6 = vadd.f32 %v980_v3, %v922_v1  ;;  %v924_v7 = vpop.f32.mrf.mxu0 }
  0xea   :  { %v925_v9 = vadd.f32 %v924_v7, %v923_v4  ;;  %v982_v10 = vpop.f32.mrf.mxu1 }
  0xeb   :  { %v983_v11 = vadd.f32 %v982_v10, %v981_v5  ;;  %v926_v12 = vpop.f32.mrf.mxu0  ;;  %v686_v14 = vadd.f32 %v1289_v8, %v584_v6 }
  0xec   :  { %v984_v13 = vpop.f32.mrf.mxu1 }
  0xed   :  { %v587_v15 = vadd.f32 %v983_v11, %v925_v9  ;;  %v927_v16 = vpop.f32.mrf.mxu0  ;;  %v699_v23 = vmax.f32 %v686_v14, 0.0 }
  0xee   :  { %v928_v17 = vadd.f32 %v927_v16, %v926_v12  ;;  %v985_v18 = vpop.f32.mrf.mxu1 }
  0xef   :  { %v687_v19 = vadd.f32 %v1289_v8, %v587_v15  ;;  %v986_v20 = vadd.f32 %v985_v18, %v984_v13  ;;  %v929_v21 = vpop.f32.mrf.mxu0 }
  0xf0   :  { %v987_v22 = vpop.f32.mrf.mxu1 }
  0xf1   :  { %v700_v24 = vmax.f32 %v687_v19, 0.0  ;;  %v592_v25 = vadd.f32 %v986_v20, %v928_v17  ;;  %v930_v26 = vpop.f32.mrf.mxu0 }
  0xf2   :  { %v931_v27 = vadd.f32 %v930_v26, %v929_v21  ;;  %v988_v28 = vpop.f32.mrf.mxu1 }
  0xf3   :  { %v872_v29 = vpack.c.bf16 %v700_v24, %v699_v23  ;;  %v989_v30 = vadd.f32 %v988_v28, %v987_v22  ;;  %v932_v31 = vpop.f32.mrf.mxu0  ;;  %v688_v33 = vadd.f32 %v1289_v8, %v592_v25 }
  0xf4   :  { %v990_v32 = vpop.f32.mrf.mxu1 }
  0xf5   :  { %873 = vst [vmem:[%s1328_s3] sm:$0xff] %v872_v29   ;;  %v595_v34 = vadd.f32 %v989_v30, %v931_v27  ;;  %v933_v35 = vpop.f32.mrf.mxu0  ;;  %v701_v42 = vmax.f32 %v688_v33, 0.0 }
  0xf6   :  { %v934_v36 = vadd.f32 %v933_v35, %v932_v31  ;;  %v991_v37 = vpop.f32.mrf.mxu1 }
  0xf7   :  { %v689_v38 = vadd.f32 %v1289_v8, %v595_v34  ;;  %v992_v39 = vadd.f32 %v991_v37, %v990_v32  ;;  %v935_v40 = vpop.f32.mrf.mxu0 }
  0xf8   :  { %v993_v41 = vpop.f32.mrf.mxu1 }
  0xf9   :  { %v702_v43 = vmax.f32 %v689_v38, 0.0  ;;  %v600_v44 = vadd.f32 %v992_v39, %v934_v36  ;;  %v936_v45 = vpop.f32.mrf.mxu0 }
  0xfa   :  { %v937_v46 = vadd.f32 %v936_v45, %v935_v40  ;;  %v994_v47 = vpop.f32.mrf.mxu1 }
  0xfb   :  { %v877_v48 = vpack.c.bf16 %v702_v43, %v701_v42  ;;  %v995_v49 = vadd.f32 %v994_v47, %v993_v41  ;;  %v938_v50 = vpop.f32.mrf.mxu0  ;;  %v690_v52 = vadd.f32 %v1289_v8, %v600_v44 }
  0xfc   :  { %v996_v51 = vpop.f32.mrf.mxu1 }
  0xfd   :  { %899 = vst [vmem:[%s1328_s3 + $0x8] sm:$0xff] %v877_v48   ;;  %v603_v53 = vadd.f32 %v995_v49, %v937_v46  ;;  %v939_v54 = vpop.f32.mrf.mxu0  ;;  %v703_v61 = vmax.f32 %v690_v52, 0.0 }
  0xfe   :  { %v940_v55 = vadd.f32 %v939_v54, %v938_v50  ;;  %v997_v56 = vpop.f32.mrf.mxu1 }
  0xff   :  { %v691_v57 = vadd.f32 %v1289_v8, %v603_v53  ;;  %v998_v58 = vadd.f32 %v997_v56, %v996_v51  ;;  %v941_v59 = vpop.f32.mrf.mxu0 }
 0x100   :  { %v999_v60 = vpop.f32.mrf.mxu1 }
 0x101   :  { %v704_v62 = vmax.f32 %v691_v57, 0.0  ;;  %v608_v63 = vadd.f32 %v998_v58, %v940_v55  ;;  %v942_v0 = vpop.f32.mrf.mxu0 }
 0x102   :  { %v943_v1 = vadd.f32 %v942_v0, %v941_v59  ;;  %v1000_v2 = vpop.f32.mrf.mxu1 }
 0x103   :  { %v882_v3 = vpack.c.bf16 %v704_v62, %v703_v61  ;;  %v1001_v4 = vadd.f32 %v1000_v2, %v999_v60  ;;  %v944_v5 = vpop.f32.mrf.mxu0  ;;  %v692_v7 = vadd.f32 %v1289_v8, %v608_v63 }
 0x104   :  { %v1002_v6 = vpop.f32.mrf.mxu1 }
 0x105   :  { %900 = vst [vmem:[%s1328_s3 + $0x10] sm:$0xff] %v882_v3   ;;  %v611_v9 = vadd.f32 %v1001_v4, %v943_v1  ;;  %v945_v10 = vpop.f32.mrf.mxu0  ;;  %v705_v17 = vmax.f32 %v692_v7, 0.0 }
 0x106   :  { %v946_v11 = vadd.f32 %v945_v10, %v944_v5  ;;  %v1003_v12 = vpop.f32.mrf.mxu1 }
 0x107   :  { %v693_v13 = vadd.f32 %v1289_v8, %v611_v9  ;;  %v1004_v14 = vadd.f32 %v1003_v12, %v1002_v6  ;;  %v947_v15 = vpop.f32.mrf.mxu0 }
 0x108   :  { %v1005_v16 = vpop.f32.mrf.mxu1 }
 0x109   :  { %v706_v18 = vmax.f32 %v693_v13, 0.0  ;;  %v616_v19 = vadd.f32 %v1004_v14, %v946_v11  ;;  %v948_v20 = vpop.f32.mrf.mxu0 }
 0x10a   :  { %v949_v21 = vadd.f32 %v948_v20, %v947_v15  ;;  %v1006_v22 = vpop.f32.mrf.mxu1 }
 0x10b   :  { %v887_v23 = vpack.c.bf16 %v706_v18, %v705_v17  ;;  %v1007_v24 = vadd.f32 %v1006_v22, %v1005_v16  ;;  %v950_v25 = vpop.f32.mrf.mxu0  ;;  %v694_v27 = vadd.f32 %v1289_v8, %v616_v19 }
 0x10c   :  { %v1008_v26 = vpop.f32.mrf.mxu1 }
 0x10d   :  { %901 = vst [vmem:[%s1328_s3 + $0x18] sm:$0xff] %v887_v23   ;;  %v619_v28 = vadd.f32 %v1007_v24, %v949_v21  ;;  %v951_v29 = vpop.f32.mrf.mxu0  ;;  %v707_v36 = vmax.f32 %v694_v27, 0.0 }
 0x10e   :  { %v952_v30 = vadd.f32 %v951_v29, %v950_v25  ;;  %v1009_v31 = vpop.f32.mrf.mxu1 }
 0x10f   :  { %v695_v32 = vadd.f32 %v1289_v8, %v619_v28  ;;  %v1010_v33 = vadd.f32 %v1009_v31, %v1008_v26  ;;  %v953_v34 = vpop.f32.mrf.mxu0 }
 0x110   :  { %v1011_v35 = vpop.f32.mrf.mxu1 }
 0x111   :  { %v708_v37 = vmax.f32 %v695_v32, 0.0  ;;  %v624_v38 = vadd.f32 %v1010_v33, %v952_v30  ;;  %v954_v39 = vpop.f32.mrf.mxu0 }
 0x112   :  { %v955_v40 = vadd.f32 %v954_v39, %v953_v34  ;;  %v1012_v41 = vpop.f32.mrf.mxu1 }
 0x113   :  { %v892_v42 = vpack.c.bf16 %v708_v37, %v707_v36  ;;  %v1013_v43 = vadd.f32 %v1012_v41, %v1011_v35  ;;  %v956_v44 = vpop.f32.mrf.mxu0  ;;  %v696_v46 = vadd.f32 %v1289_v8, %v624_v38 }
 0x114   :  { %v1014_v45 = vpop.f32.mrf.mxu1 }
 0x115   :  { %902 = vst [vmem:[%s1328_s3 + $0x20] sm:$0xff] %v892_v42   ;;  %v627_v47 = vadd.f32 %v1013_v43, %v955_v40  ;;  %v957_v48 = vpop.f32.mrf.mxu0  ;;  %v709_v55 = vmax.f32 %v696_v46, 0.0 }
 0x116   :  { %v958_v49 = vadd.f32 %v957_v48, %v956_v44  ;;  %v1015_v50 = vpop.f32.mrf.mxu1 }
 0x117   :  { %v697_v51 = vadd.f32 %v1289_v8, %v627_v47  ;;  %v1016_v52 = vadd.f32 %v1015_v50, %v1014_v45  ;;  %v959_v53 = vpop.f32.mrf.mxu0 }
 0x118   :  { %v1017_v54 = vpop.f32.mrf.mxu1 }
 0x119   :  { %v710_v56 = vmax.f32 %v697_v51, 0.0  ;;  %v632_v57 = vadd.f32 %v1016_v52, %v958_v49  ;;  %v960_v58 = vpop.f32.mrf.mxu0 }
 0x11a   :  { %v1018_v59 = vpop.f32.mrf.mxu1 }
 0x11b   :  { %v897_v60 = vpack.c.bf16 %v710_v56, %v709_v55  ;;  %v698_v61 = vadd.f32 %v1289_v8, %v632_v57 }
 0x11d   :  { %903 = vst [vmem:[%s1328_s3 + $0x28] sm:$0xff] %v897_v60   ;;  %v711_v62 = vmax.f32 %v698_v61, 0.0 }
 0x11f   :  { %v868_v63 = vpack.c.bf16 %v711_v62, %v711_v62 }
 0x121   :  { %777 = vst [vmem:[%s1328_s3 + $0x30] sm:$0xf] %v868_v63 }

// kernel: augmented_nature_cnn_forward.6
= control target key start
LH: loop header
LB: loop body
LE: loop exit
PB: predicated region body
PF: predicated region fallthrough
CT: control target
= control target key end

     0   :  { %s1246_s1 = inlined_call_operand.vmem [shape: bf16[640,128], index: 1, kind: input, shape index: {}]   ;;  %s1247_s0 = inlined_call_operand.vmem [shape: bf16[56,640], index: 0, kind: input, shape index: {}]   ;;  %s1248_s2 = inlined_call_operand.vmem [shape: f32[1,128], index: 2, kind: input, shape index: {}]   ;;  %s1249_s3 = inlined_call_operand.vmem [shape: bf16[56,128], index: 3, kind: output, shape index: {}]  }
   0x1   :  { %v971_v0 = vld [vmem:[%s1246_s1 + $0x78] sm:$0xff]   ;;  %v975_v4 = vld [vmem:[%s1246_s1 + $0x70] sm:$0xff]   ;;  %v979_v8 = vld [vmem:[%s1246_s1 + $0x68] sm:$0xff]  }
   0x2   :  { %v972_v1 = vld [vmem:[%s1246_s1 + $0xf8] sm:$0xff]   ;;  %839 = vmatprep.subr.bf16.mxu0 %v971_v0  ;;  %v976_v5 = vld [vmem:[%s1246_s1 + $0xf0] sm:$0xff]   ;;  %v980_v9 = vld [vmem:[%s1246_s1 + $0xe8] sm:$0xff]  }
   0x3   :  { %v973_v2 = vld [vmem:[%s1246_s1 + $0x38] sm:$0xff]   ;;  %879 = vmatprep.subr.bf16.mxu1 %v972_v1  ;;  %v977_v6 = vld [vmem:[%s1246_s1 + $0x30] sm:$0xff]   ;;  %v981_v10 = vld [vmem:[%s1246_s1 + $0x28] sm:$0xff]  }
   0x4   :  { %v974_v3 = vld [vmem:[%s1246_s1 + $0xb8] sm:$0xff]   ;;  %840 = vmatpush3.bf16.msra.mxu0 %v973_v2  ;;  %v978_v7 = vld [vmem:[%s1246_s1 + $0xb0] sm:$0xff]   ;;  %v982_v11 = vld [vmem:[%s1246_s1 + $0xa8] sm:$0xff]  }
   0x5   :  { %880 = vmatpush3.bf16.msra.mxu1 %v974_v3  ;;  %841 = vmatprep.subr.bf16.mxu0 %v975_v4  ;;  %v983_v12 = vld [vmem:[%s1246_s1 + $0x60] sm:$0xff]   ;;  %v987_v16 = vld [vmem:[%s1246_s1 + $0x58] sm:$0xff]   ;;  %v991_v20 = vld [vmem:[%s1246_s1 + $0x50] sm:$0xff]  }
   0x6   :  { %881 = vmatprep.subr.bf16.mxu1 %v976_v5  ;;  %v984_v13 = vld [vmem:[%s1246_s1 + $0xe0] sm:$0xff]   ;;  %v988_v17 = vld [vmem:[%s1246_s1 + $0xd8] sm:$0xff]   ;;  %v992_v21 = vld [vmem:[%s1246_s1 + $0xd0] sm:$0xff]  }
   0x7   :  { %v985_v14 = vld [vmem:[%s1246_s1 + $0x20] sm:$0xff]   ;;  %v989_v18 = vld [vmem:[%s1246_s1 + $0x18] sm:$0xff]   ;;  %v993_v22 = vld [vmem:[%s1246_s1 + $0x10] sm:$0xff]  }
   0x8   :  { %842 = vmatpush3.bf16.msra.mxu0 %v977_v6  ;;  %v986_v15 = vld [vmem:[%s1246_s1 + $0xa0] sm:$0xff]   ;;  %v990_v19 = vld [vmem:[%s1246_s1 + $0x98] sm:$0xff]   ;;  %v994_v23 = vld [vmem:[%s1246_s1 + $0x90] sm:$0xff]  }
   0x9   :  { %882 = vmatpush3.bf16.msra.mxu1 %v978_v7  ;;  %843 = vmatprep.subr.bf16.mxu0 %v979_v8  ;;  %v995_v24 = vld [vmem:[%s1246_s1 + $0x48] sm:$0xff]   ;;  %v999_v28 = vld [vmem:[%s1246_s1 + $0x40] sm:$0xff]   ;;  %v1009_v36 = vld [vmem:[%s1246_s1 + $0x138] sm:$0xff]  }
   0xa   :  { %883 = vmatprep.subr.bf16.mxu1 %v980_v9  ;;  %v996_v25 = vld [vmem:[%s1246_s1 + $0xc8] sm:$0xff]   ;;  %v1000_v29 = vld [vmem:[%s1246_s1 + $0xc0] sm:$0xff]   ;;  %v1010_v37 = vld [vmem:[%s1246_s1 + $0x130] sm:$0xff]  }
   0xb   :  { %v997_v26 = vld [vmem:[%s1246_s1 + $0x8] sm:$0xff]   ;;  %v1001_v30 = vld [vmem:[%s1246_s1] sm:$0xff]   ;;  %v1021_v45 = vld [vmem:[%s1247_s0 + $0x5c] ss:$20 sps:$4 sm:$0xff]  }
   0xc   :  { %844 = vmatpush3.bf16.msra.mxu0 %v981_v10  ;;  %v998_v27 = vld [vmem:[%s1246_s1 + $0x88] sm:$0xff]   ;;  %v1002_v31 = vld [vmem:[%s1246_s1 + $0x80] sm:$0xff]   ;;  %v1025_v46 = vld [vmem:[%s1246_s1 + $0x118] sm:$0xff]  }
   0xd   :  { %884 = vmatpush3.bf16.msra.mxu1 %v982_v11  ;;  %845 = vmatprep.subr.bf16.mxu0 %v983_v12  ;;  %v1003_v32 = vld [vmem:[%s1247_s0] ss:$20 sps:$4 sm:$0xff]   ;;  %v1005_v33 = vld [vmem:[%s1247_s0 + $0x4] ss:$20 sps:$4 sm:$0xff]   ;;  %v1006_v34 = vld [vmem:[%s1247_s0 + $0x8] ss:$20 sps:$4 sm:$0xff]  }
   0xe   :  { %885 = vmatprep.subr.bf16.mxu1 %v984_v13  ;;  %v1008_v35 = vld [vmem:[%s1247_s0 + $0xc] ss:$20 sps:$4 sm:$0xff]   ;;  %502 = vmatprep.mubr.bf16.mxu0 %v1005_v33  ;;  %v1013_v39 = vld [vmem:[%s1247_s0 + $0x34] ss:$20 sps:$4 sm:$0xff]   ;;  %v1016_v42 = vld [vmem:[%s1247_s0 + $0x30] ss:$20 sps:$4 sm:$0xff]  }
   0xf   :  { %566 = vmatprep.mubr.bf16.mxu1 %v1008_v35  ;;  %v1011_v38 = vld [vmem:[%s1247_s0 + $0x2c] ss:$20 sps:$4 sm:$0xff]   ;;  %v1015_v40 = vld [vmem:[%s1247_s0 + $0x28] ss:$20 sps:$4 sm:$0xff]   ;;  %v1023_v49 = vld [vmem:[%s1247_s0 + $0x50] ss:$20 sps:$4 sm:$0xff]  }
  0x10   :  { %846 = vmatpush3.bf16.msra.mxu0 %v985_v14  ;;  %v1017_v41 = vld [vmem:[%s1246_s1 + $0x128] sm:$0xff]   ;;  %v1018_v44 = vld [vmem:[%s1246_s1 + $0x120] sm:$0xff]   ;;  %v51_v47 = vld [vmem:[%s1247_s0 + $0x78] sm:$0xff] }
  0x11   :  { %886 = vmatpush3.bf16.msra.mxu1 %v986_v15  ;;  %847 = vmatprep.subr.bf16.mxu0 %v987_v16  ;;  %v1019_v43 = vld [vmem:[%s1247_s0 + $0x54] ss:$20 sps:$4 sm:$0xff]   ;;  %v52_v48 = vld [vmem:[%s1247_s0 + $0x80] sm:$0xff]  ;;  %v1024_v50 = vld [vmem:[%s1247_s0 + $0x58] ss:$20 sps:$4 sm:$0xff]   ;;  %v763_v51 = vcombine.high %v51_v47, %v51_v47  ;;  %v762_v55 = vcombine.low %v51_v47, %v51_v47 }
  0x12   :  { %887 = vmatprep.subr.bf16.mxu1 %v988_v17  ;;  %v765_v52 = vcombine.high %v52_v48, %v52_v48  ;;  %v1026_v53 = vld [vmem:[%s1246_s1 + $0x110] sm:$0xff]   ;;  %v1031_v54 = vld [vmem:[%s1246_s1 + $0x108] sm:$0xff]   ;;  %v764_v56 = vcombine.low %v52_v48, %v52_v48  ;;  %v1032_v59 = vld [vmem:[%s1246_s1 + $0x100] sm:$0xff]  }
  0x13   :  { %v1033_v57 = vld [vmem:[%s1247_s0 + $0x10] ss:$20 sps:$4 sm:$0xff]   ;;  %v1034_v58 = vld [vmem:[%s1247_s0 + $0x60] ss:$20 sps:$4 sm:$0xff]   ;;  %v1035_v60 = vld [vmem:[%s1247_s0 + $0x38] ss:$20 sps:$4 sm:$0xff]  }
  0x14   :  { %848 = vmatpush3.bf16.msra.mxu0 %v989_v18  ;;  %v1036_v61 = vld [vmem:[%s1247_s0 + $0x88] ss:$0 sps:$4 sm:$0xff]  }
  0x15   :  { %888 = vmatpush3.bf16.msra.mxu1 %v990_v19  ;;  %849 = vmatprep.subr.bf16.mxu0 %v991_v20 }
  0x16   :  { %889 = vmatprep.subr.bf16.mxu1 %v992_v21 }
  0x18   :  { %850 = vmatpush3.bf16.msra.mxu0 %v993_v22 }
  0x19   :  { %890 = vmatpush3.bf16.msra.mxu1 %v994_v23  ;;  %851 = vmatprep.subr.bf16.mxu0 %v995_v24 }
  0x1a   :  { %891 = vmatprep.subr.bf16.mxu1 %v996_v25 }
  0x1c   :  { %852 = vmatpush3.bf16.msra.mxu0 %v997_v26 }
  0x1d   :  { %892 = vmatpush3.bf16.msra.mxu1 %v998_v27  ;;  %853 = vmatprep.subr.bf16.mxu0 %v999_v28 }
  0x1e   :  { %893 = vmatprep.subr.bf16.mxu1 %v1000_v29 }
  0x20   :  { %854 = vmatpush3.bf16.msra.mxu0 %v1001_v30 }
  0x21   :  { %894 = vmatpush3.bf16.msra.mxu1 %v1002_v31  ;;  %931 = vmatprep.subr.bf16.mxu0 %v1009_v36 }
  0x22   :  { %955 = vmatprep.subr.bf16.mxu1 %v1009_v36 }
  0x23   :  { %503 = vmatmul.mubr.bf16.vlgmr.msra.gmra.mxu0 %v1003_v32 }
  0x24   :  { %567 = vmatmul.mubr.bf16.vlgmr.msra.gmra.mxu1 %v1006_v34  ;;  %932 = vmatpush3.bf16.msra.mxu0 %v1009_v36 }
  0x25   :  { %963 = vmatpush3.bf16.msra.mxu1 %v1009_v36  ;;  %933 = vmatprep.subr.bf16.mxu0 %v1010_v37 }
  0x26   :  { %956 = vmatprep.subr.bf16.mxu1 %v1010_v37  ;;  %510 = vmatprep.mubr.bf16.mxu0 %v1011_v38 }
  0x27   :  { %574 = vmatprep.mubr.bf16.mxu1 %v1013_v39 }
  0x28   :  { %934 = vmatpush3.bf16.msra.mxu0 %v1010_v37 }
  0x29   :  { %964 = vmatpush3.bf16.msra.mxu1 %v1010_v37  ;;  %935 = vmatprep.subr.bf16.mxu0 %v1017_v41 }
  0x2a   :  { %957 = vmatprep.subr.bf16.mxu1 %v1017_v41 }
  0x2b   :  { %511 = vmatmul.mubr.bf16.gmra.mxu0 %v1015_v40 }
  0x2c   :  { %575 = vmatmul.mubr.bf16.gmra.mxu1 %v1016_v42  ;;  %518 = vmatprep.mubr.bf16.mxu0 %v1019_v43 }
  0x2d   :  { %936 = vmatpush3.bf16.msra.mxu0 %v1017_v41  ;;  %582 = vmatprep.mubr.bf16.mxu1 %v1021_v45 }
  0x2e   :  { %965 = vmatpush3.bf16.msra.mxu1 %v1017_v41  ;;  %937 = vmatprep.subr.bf16.mxu0 %v1018_v44 }
  0x2f   :  { %958 = vmatprep.subr.bf16.mxu1 %v1018_v44 }
  0x31   :  { %938 = vmatpush3.bf16.msra.mxu0 %v1018_v44 }
  0x32   :  { %966 = vmatpush3.bf16.msra.mxu1 %v1018_v44  ;;  %939 = vmatprep.subr.bf16.mxu0 %v1025_v46 }
  0x33   :  { %519 = vmatmul.mubr.bf16.gmra.mxu0 %v1023_v49  ;;  %959 = vmatprep.subr.bf16.mxu1 %v1025_v46 }
  0x34   :  { %583 = vmatmul.mubr.bf16.gmra.mxu1 %v1024_v50  ;;  %526 = vmatprep.mubr.bf16.mxu0 %v763_v51 }
  0x35   :  { %940 = vmatpush3.bf16.msra.mxu0 %v1025_v46  ;;  %590 = vmatprep.mubr.bf16.mxu1 %v765_v52 }
  0x36   :  { %967 = vmatpush3.bf16.msra.mxu1 %v1025_v46  ;;  %941 = vmatprep.subr.bf16.mxu0 %v1026_v53  ;;  %v807_v46 = vld [vmem:[%s1248_s2] ss:$0 sm:$0xff] }
  0x37   :  { %960 = vmatprep.subr.bf16.mxu1 %v1026_v53 }
  0x39   :  { %942 = vmatpush3.bf16.msra.mxu0 %v1026_v53 }
  0x3a   :  { %968 = vmatpush3.bf16.msra.mxu1 %v1026_v53  ;;  %943 = vmatprep.subr.bf16.mxu0 %v1031_v54 }
  0x3b   :  { %527 = vmatmul.mubr.bf16.gmra.mxu0 %v762_v55  ;;  %961 = vmatprep.subr.bf16.mxu1 %v1031_v54 }
  0x3c   :  { %591 = vmatmul.mubr.bf16.gmra.mxu1 %v764_v56  ;;  %947 = vmatprep.mubr.bf16.mxu0 %v1033_v57 }
  0x3d   :  { %944 = vmatpush3.bf16.msra.mxu0 %v1031_v54  ;;  %951 = vmatprep.mubr.bf16.mxu1 %v1034_v58 }
  0x3e   :  { %969 = vmatpush3.bf16.msra.mxu1 %v1031_v54  ;;  %945 = vmatprep.subr.bf16.mxu0 %v1032_v59 }
  0x3f   :  { %962 = vmatprep.subr.bf16.mxu1 %v1032_v59 }
  0x41   :  { %946 = vmatpush3.bf16.msra.mxu0 %v1032_v59 }
  0x42   :  { %970 = vmatpush3.bf16.msra.mxu1 %v1032_v59 }
  0x44   :  { %948 = vmatmul.mubr.bf16.vlgmr.msra.gmra.mxu0 %v1035_v60 }
  0x45   :  { %952 = vmatmul.mubr.bf16.vlgmr.msra.gmra.mxu1 %v1036_v61 }
  0xe3   :  { %v855_v62 = vpop.f32.mrf.mxu0 }
  0xe4   :  { %v895_v63 = vpop.f32.mrf.mxu1 }
  0xe5   :  { %v856_v0 = vpop.f32.mrf.mxu0 }
  0xe6   :  { %v896_v1 = vpop.f32.mrf.mxu1  ;;  %v857_v32 = vadd.f32 %v856_v0, %v855_v62 }
  0xe7   :  { %v858_v2 = vpop.f32.mrf.mxu0  ;;  %v897_v33 = vadd.f32 %v896_v1, %v895_v63 }
  0xe8   :  { %v898_v3 = vpop.f32.mrf.mxu1 }
  0xe9   :  { %v859_v4 = vpop.f32.mrf.mxu0  ;;  %v569_v48 = vadd.f32 %v897_v33, %v857_v32 }
  0xea   :  { %v899_v5 = vpop.f32.mrf.mxu1  ;;  %v860_v43 = vadd.f32 %v859_v4, %v858_v2 }
  0xeb   :  { %v861_v6 = vpop.f32.mrf.mxu0  ;;  %v900_v44 = vadd.f32 %v899_v5, %v898_v3 }
  0xec   :  { %v901_v7 = vpop.f32.mrf.mxu1 }
  0xed   :  { %v862_v8 = vpop.f32.mrf.mxu0  ;;  %v572_v63 = vadd.f32 %v900_v44, %v860_v43 }
  0xee   :  { %v902_v9 = vpop.f32.mrf.mxu1  ;;  %v863_v26 = vadd.f32 %v862_v8, %v861_v6 }
  0xef   :  { %v864_v10 = vpop.f32.mrf.mxu0  ;;  %v903_v27 = vadd.f32 %v902_v9, %v901_v7 }
  0xf0   :  { %v904_v11 = vpop.f32.mrf.mxu1 }
  0xf1   :  { %v865_v12 = vpop.f32.mrf.mxu0  ;;  %v577_v40 = vadd.f32 %v903_v27, %v863_v26 }
  0xf2   :  { %v905_v13 = vpop.f32.mrf.mxu1  ;;  %v866_v38 = vadd.f32 %v865_v12, %v864_v10 }
  0xf3   :  { %v867_v14 = vpop.f32.mrf.mxu0  ;;  %v906_v39 = vadd.f32 %v905_v13, %v904_v11 }
  0xf4   :  { %v907_v15 = vpop.f32.mrf.mxu1 }
  0xf5   :  { %v868_v16 = vpop.f32.mrf.mxu0  ;;  %v580_v56 = vadd.f32 %v906_v39, %v866_v38 }
  0xf6   :  { %v908_v17 = vpop.f32.mrf.mxu1  ;;  %v869_v35 = vadd.f32 %v868_v16, %v867_v14 }
  0xf7   :  { %v870_v18 = vpop.f32.mrf.mxu0  ;;  %v909_v36 = vadd.f32 %v908_v17, %v907_v15 }
  0xf8   :  { %v910_v19 = vpop.f32.mrf.mxu1 }
  0xf9   :  { %v871_v20 = vpop.f32.mrf.mxu0  ;;  %v585_v53 = vadd.f32 %v909_v36, %v869_v35 }
  0xfa   :  { %v911_v21 = vpop.f32.mrf.mxu1  ;;  %v872_v49 = vadd.f32 %v871_v20, %v870_v18 }
  0xfb   :  { %v873_v22 = vpop.f32.mrf.mxu0  ;;  %v912_v50 = vadd.f32 %v911_v21, %v910_v19 }
  0xfc   :  { %v913_v23 = vpop.f32.mrf.mxu1 }
  0xfd   :  { %v874_v24 = vpop.f32.mrf.mxu0  ;;  %v588_v2 = vadd.f32 %v912_v50, %v872_v49 }
  0xfe   :  { %v914_v25 = vpop.f32.mrf.mxu1  ;;  %v875_v29 = vadd.f32 %v874_v24, %v873_v22 }
  0xff   :  { %v876_v28 = vpop.f32.mrf.mxu0  ;;  %v915_v30 = vadd.f32 %v914_v25, %v913_v23 }
 0x100   :  { %v916_v31 = vpop.f32.mrf.mxu1 }
 0x101   :  { %v877_v34 = vpop.f32.mrf.mxu0  ;;  %v593_v42 = vadd.f32 %v915_v30, %v875_v29 }
 0x102   :  { %v917_v37 = vpop.f32.mrf.mxu1 }
 0x104   :  { %v949_v41 = vpop.f32.mrf.mxu0 }
 0x105   :  { %v641_v45 = vadd.f32 %v949_v41, %v577_v40  ;;  %v953_v47 = vpop.f32.mrf.mxu1 }
 0x106   :  { %v657_v51 = vadd.f32 %v953_v47, %v593_v42  ;;  %v632_v52 = vpop.f32.mrf.mxu0 }
 0x107   :  { %v633_v54 = vadd.f32 %v632_v52, %v569_v48  ;;  %v648_v55 = vpop.f32.mrf.mxu1  ;;  %v695_v60 = vadd.f32 %v807_v46, %v641_v45 }
 0x108   :  { %v699_v57 = vadd.f32 %v807_v46, %v657_v51  ;;  %v649_v58 = vadd.f32 %v648_v55, %v585_v53  ;;  %v950_v59 = vpop.f32.mrf.mxu0 }
 0x109   :  { %v644_v61 = vadd.f32 %v950_v59, %v580_v56  ;;  %v954_v62 = vpop.f32.mrf.mxu1  ;;  %v693_v3 = vadd.f32 %v807_v46, %v633_v54  ;;  %v702_v10 = vmax.f32 %v695_v60, 0.0 }
 0x10a   :  { %v706_v0 = vmax.f32 %v699_v57, 0.0  ;;  %v635_v1 = vpop.f32.mrf.mxu0  ;;  %v697_v8 = vadd.f32 %v807_v46, %v649_v58 }
 0x10b   :  { %v696_v4 = vadd.f32 %v807_v46, %v644_v61  ;;  %v636_v5 = vadd.f32 %v635_v1, %v572_v63  ;;  %v651_v6 = vpop.f32.mrf.mxu1  ;;  %v700_v14 = vmax.f32 %v693_v3, 0.0 }
 0x10c   :  { %v821_v7 = vpack.c.bf16 %v706_v0, %v706_v0  ;;  %v652_v9 = vadd.f32 %v651_v6, %v588_v2  ;;  %v704_v17 = vmax.f32 %v697_v8, 0.0 }
 0x10d   :  { %v703_v11 = vmax.f32 %v696_v4, 0.0  ;;  %v694_v12 = vadd.f32 %v807_v46, %v636_v5 }
 0x10e   :  { %742 = vst [vmem:[%s1249_s3 + $0x18] sm:$0xf] %v821_v7  ;;  %v698_v13 = vadd.f32 %v807_v46, %v652_v9 }
 0x10f   :  { %v830_v15 = vpack.c.bf16 %v703_v11, %v702_v10  ;;  %v701_v16 = vmax.f32 %v694_v12, 0.0 }
 0x110   :  { %v705_v18 = vmax.f32 %v698_v13, 0.0 }
 0x111   :  { %837 = vst [vmem:[%s1249_s3 + $0x8] sm:$0xff] %v830_v15   ;;  %v825_v19 = vpack.c.bf16 %v701_v16, %v700_v14 }
 0x112   :  { %v835_v20 = vpack.c.bf16 %v705_v18, %v704_v17 }
 0x113   :  { %826 = vst [vmem:[%s1249_s3] sm:$0xff] %v825_v19  }
 0x114   :  { %838 = vst [vmem:[%s1249_s3 + $0x10] sm:$0xff] %v835_v20  }

// kernel: augmented_nature_cnn_forward.7
= control target key start
LH: loop header
LB: loop body
LE: loop exit
PB: predicated region body
PF: predicated region fallthrough
CT: control target
= control target key end

     0   :  { %s1726_s12 = smov 0   ;;  %s1728_s13 = smov 0   ;;  %s1926_s0 = inlined_call_operand.vmem [shape: bf16[8,2048], index: 0, kind: input, shape index: {}]   ;;  %s1927_s1 = inlined_call_operand.vmem [shape: bf16[2048,512], index: 1, kind: input, shape index: {}]   ;;  %s1928_s2 = inlined_call_operand.vmem [shape: f32[1,512], index: 2, kind: input, shape index: {}]   ;;  %s1929_s3 = inlined_call_operand.vmem [shape: f32[8,512], index: 3, kind: output, shape index: {}]  }
   0x1   :  { %s1730_s14 = smov 0  }
   0x2 LB: > { %s22_s15 = sadd.s32 1, %s1699_s13  ;;  %p1316_p0 = scmp.ge.s32.totalorder %s1703_s14, 1  ;;  %s1703_s14 = sphi %s1730_s14, %s13_s14   ;;  %s1699_s13 = sphi %s1728_s13, %s1931_s13   ;;  %s1695_s12 = sphi %s1726_s12, %s1930_s12  }
   0x3   : > { %p23_p1 = scmp.ge.s32.totalorder %s22_s15, 4  ;;  %p168_p2 = scmp.lt.s32.totalorder %s1703_s14, 5 }
   0x5   : > { %s1933_s15 = smov (%p23_p1, %s22_s15), 0  ;;  %p169_p3 = pnand %p1316_p0, %p168_p2 }
   0x6   : > { %s1317_s16 = sshll.u32 (!%p169_p3), %s1695_s12, 2  ;;  %s1319_s17 = sshll.u32 (!%p169_p3), %s1695_s12, 6 }
   0x7   : > { %172 = sbr.rel (%p169_p3) target bundleno = 367 (0x16f), region = 32  ;;  %p205_p4 = scmp.lt.s32.totalorder (!%p169_p3), %s1317_s16, 15 }
   0x8   : > { %p213_p5 = scmp.lt.s32.totalorder (!%p169_p3), %s1319_s17, 255  ;;  %p1322_p6 = scmp.ne.s32.totalorder (!%p169_p3), %s1695_s12, 0 }
   0xc   : > { %s1935_s16 = smov (!%p205_p4, %s1317_s16), 15  ;;  %s1937_s17 = smov (!%p213_p5, %s1319_s17), 255 }
   0xd   : > { %s1318_s18 = sshll.u32 %s1935_s16, 2  ;;  %s1459_s22 = sshll.u32 %s1937_s17, 4 }
   0xe   : > { %s1751_s21 = scalar_lea.vmem %s1926_s0, %s1318_s18  ;;  %s1756_s25 = scalar_lea.vmem %s1927_s1, %s1459_s22 }
   0xf   : > { %227 = sbr.rel (%p1322_p6) target bundleno = 23 (0x17), region = 36 }
  0x14   : > { %v1705_v0 = vmov 0.0  }
  0x15   : > { %228 = vst [vmem:[#allocation2 + $0x10] sm:$0xff] %v1705_v0  ;;  %229 = vst [vmem:[#allocation2] sm:$0xff] %v1705_v0 }
  0x16   : > { %230 = vst [vmem:[#allocation2 + $0x18] sm:$0xff] %v1705_v0  ;;  %231 = vst [vmem:[#allocation2 + $0x8] sm:$0xff] %v1705_v0 }
  0x17 PF: > { %v1485_v1 = vld [vmem:[%s1756_s25 + $0xe4] ss:$16 sps:$4 sm:$0xff]   ;;  %v1489_v3 = vld [vmem:[%s1756_s25 + $0xe0] ss:$16 sps:$4 sm:$0xff]   ;;  %v237_v49 = vld [vmem:[%s1751_s21 + $0x8] sm:$0xff]  ;;  %p1455_p7 = scmp.ne.s32.totalorder %s1695_s12, 3 }
  0x18   : > { %v1487_v2 = vld [vmem:[%s1756_s25 + $0x2e4] ss:$16 sps:$4 sm:$0xff]   ;;  %1020 = vmatprep.subr.bf16.mxu0 %v1485_v1  ;;  %v1490_v4 = vld [vmem:[%s1756_s25 + $0x2e0] ss:$16 sps:$4 sm:$0xff]   ;;  %v1326_v52 = vcombine.high %v237_v49, %v237_v49 }
  0x19   : > { %1061 = vmatprep.subr.bf16.mxu1 %v1487_v2  ;;  %v1491_v5 = vld [vmem:[%s1756_s25 + $0xc4] ss:$16 sps:$4 sm:$0xff]   ;;  %1021 = vmatpush1.bf16.msra.mxu0 %v1489_v3  ;;  %v1495_v7 = vld [vmem:[%s1756_s25 + $0xc0] ss:$16 sps:$4 sm:$0xff]  }
  0x1a   : > { %1062 = vmatpush1.bf16.msra.mxu1 %v1490_v4  ;;  %v1493_v6 = vld [vmem:[%s1756_s25 + $0x2c4] ss:$16 sps:$4 sm:$0xff]   ;;  %1022 = vmatprep.subr.bf16.mxu0 %v1491_v5  ;;  %v1496_v8 = vld [vmem:[%s1756_s25 + $0x2c0] ss:$16 sps:$4 sm:$0xff]   ;;  %v1587_v5 = vld [vmem:[%s1756_s25 + $0xec] ss:$16 sps:$4 sm:$0xff]  }
  0x1b   : > { %1063 = vmatprep.subr.bf16.mxu1 %v1493_v6  ;;  %v1497_v9 = vld [vmem:[%s1756_s25 + $0xa4] ss:$16 sps:$4 sm:$0xff]   ;;  %v1501_v11 = vld [vmem:[%s1756_s25 + $0xa0] ss:$16 sps:$4 sm:$0xff]   ;;  %1093 = vmatprep.mubr.bf16.mxu1 %v1326_v52  ;;  %v1590_v6 = vld [vmem:[%s1756_s25 + $0x2ec] ss:$16 sps:$4 sm:$0xff]  }
  0x1c   : > { %v1499_v10 = vld [vmem:[%s1756_s25 + $0x2a4] ss:$16 sps:$4 sm:$0xff]   ;;  %v1502_v12 = vld [vmem:[%s1756_s25 + $0x2a0] ss:$16 sps:$4 sm:$0xff]  }
  0x1d   : > { %1023 = vmatpush1.bf16.msra.mxu0 %v1495_v7  ;;  %v1503_v13 = vld [vmem:[%s1756_s25 + $0x84] ss:$16 sps:$4 sm:$0xff]   ;;  %v1507_v15 = vld [vmem:[%s1756_s25 + $0x80] ss:$16 sps:$4 sm:$0xff]  }
  0x1e   : > { %1064 = vmatpush1.bf16.msra.mxu1 %v1496_v8  ;;  %1024 = vmatprep.subr.bf16.mxu0 %v1497_v9  ;;  %v1505_v14 = vld [vmem:[%s1756_s25 + $0x284] ss:$16 sps:$4 sm:$0xff]   ;;  %v1508_v16 = vld [vmem:[%s1756_s25 + $0x280] ss:$16 sps:$4 sm:$0xff]   ;;  %v1832_v8 = vcombine.low %v237_v49, %v237_v49  ;;  %v1585_v9 = vld [vmem:[%s1756_s25 + $0xe8] ss:$16 sps:$4 sm:$0xff]  }
  0x1f   : > { %1065 = vmatprep.subr.bf16.mxu1 %v1499_v10  ;;  %v1509_v17 = vld [vmem:[%s1756_s25 + $0x64] ss:$16 sps:$4 sm:$0xff]   ;;  %v1513_v19 = vld [vmem:[%s1756_s25 + $0x60] ss:$16 sps:$4 sm:$0xff]   ;;  %v1588_v10 = vld [vmem:[%s1756_s25 + $0x2e8] ss:$16 sps:$4 sm:$0xff]  }
  0x20   : > { %v1511_v18 = vld [vmem:[%s1756_s25 + $0x264] ss:$16 sps:$4 sm:$0xff]   ;;  %v1514_v20 = vld [vmem:[%s1756_s25 + $0x260] ss:$16 sps:$4 sm:$0xff]   ;;  %v1645_v49 = vld [vmem:[%s1756_s25 + $0x1a8] ss:$16 sps:$4 sm:$0xff]  }
  0x21   : > { %1025 = vmatpush1.bf16.msra.mxu0 %v1501_v11  ;;  %v1515_v21 = vld [vmem:[%s1756_s25 + $0x44] ss:$16 sps:$4 sm:$0xff]   ;;  %v1519_v23 = vld [vmem:[%s1756_s25 + $0x40] ss:$16 sps:$4 sm:$0xff]   ;;  %v1593_v11 = vld [vmem:[%s1756_s25 + $0xcc] ss:$16 sps:$4 sm:$0xff]  }
  0x22   : > { %1066 = vmatpush1.bf16.msra.mxu1 %v1502_v12  ;;  %1026 = vmatprep.subr.bf16.mxu0 %v1503_v13  ;;  %v1517_v22 = vld [vmem:[%s1756_s25 + $0x244] ss:$16 sps:$4 sm:$0xff]   ;;  %v1520_v24 = vld [vmem:[%s1756_s25 + $0x240] ss:$16 sps:$4 sm:$0xff]   ;;  %v1596_v12 = vld [vmem:[%s1756_s25 + $0x2cc] ss:$16 sps:$4 sm:$0xff]  }
  0x23   : > { %1067 = vmatprep.subr.bf16.mxu1 %v1505_v14  ;;  %v1521_v25 = vld [vmem:[%s1756_s25 + $0x24] ss:$16 sps:$4 sm:$0xff]   ;;  %v1525_v27 = vld [vmem:[%s1756_s25 + $0x20] ss:$16 sps:$4 sm:$0xff]   ;;  %v1591_v13 = vld [vmem:[%s1756_s25 + $0xc8] ss:$16 sps:$4 sm:$0xff]  }
  0x24   : > { %v1523_v26 = vld [vmem:[%s1756_s25 + $0x224] ss:$16 sps:$4 sm:$0xff]   ;;  %v1526_v28 = vld [vmem:[%s1756_s25 + $0x220] ss:$16 sps:$4 sm:$0xff]   ;;  %v1594_v14 = vld [vmem:[%s1756_s25 + $0x2c8] ss:$16 sps:$4 sm:$0xff]  }
  0x25   : > { %1027 = vmatpush1.bf16.msra.mxu0 %v1507_v15  ;;  %v1527_v29 = vld [vmem:[%s1756_s25 + $0x4] ss:$16 sps:$4 sm:$0xff]   ;;  %v1531_v31 = vld [vmem:[%s1756_s25] ss:$16 sps:$4 sm:$0xff]   ;;  %v1599_v15 = vld [vmem:[%s1756_s25 + $0xac] ss:$16 sps:$4 sm:$0xff]  }
  0x26   : > { %1068 = vmatpush1.bf16.msra.mxu1 %v1508_v16  ;;  %1028 = vmatprep.subr.bf16.mxu0 %v1509_v17  ;;  %v1529_v30 = vld [vmem:[%s1756_s25 + $0x204] ss:$16 sps:$4 sm:$0xff]   ;;  %v1532_v32 = vld [vmem:[%s1756_s25 + $0x200] ss:$16 sps:$4 sm:$0xff]   ;;  %v1602_v16 = vld [vmem:[%s1756_s25 + $0x2ac] ss:$16 sps:$4 sm:$0xff]  }
  0x27   : > { %1069 = vmatprep.subr.bf16.mxu1 %v1511_v18  ;;  %v1533_v33 = vld [vmem:[%s1756_s25 + $0x1e4] ss:$16 sps:$4 sm:$0xff]   ;;  %v1537_v35 = vld [vmem:[%s1756_s25 + $0x1e0] ss:$16 sps:$4 sm:$0xff]   ;;  %v1597_v17 = vld [vmem:[%s1756_s25 + $0xa8] ss:$16 sps:$4 sm:$0xff]  }
  0x28   : > { %v1535_v34 = vld [vmem:[%s1756_s25 + $0x3e4] ss:$16 sps:$4 sm:$0xff]   ;;  %v1538_v36 = vld [vmem:[%s1756_s25 + $0x3e0] ss:$16 sps:$4 sm:$0xff]   ;;  %v1600_v18 = vld [vmem:[%s1756_s25 + $0x2a8] ss:$16 sps:$4 sm:$0xff]  }
  0x29   : > { %1029 = vmatpush1.bf16.msra.mxu0 %v1513_v19  ;;  %v1539_v37 = vld [vmem:[%s1756_s25 + $0x1c4] ss:$16 sps:$4 sm:$0xff]   ;;  %v1543_v39 = vld [vmem:[%s1756_s25 + $0x1c0] ss:$16 sps:$4 sm:$0xff]   ;;  %v1605_v19 = vld [vmem:[%s1756_s25 + $0x8c] ss:$16 sps:$4 sm:$0xff]  }
  0x2a   : > { %1070 = vmatpush1.bf16.msra.mxu1 %v1514_v20  ;;  %1030 = vmatprep.subr.bf16.mxu0 %v1515_v21  ;;  %v1541_v38 = vld [vmem:[%s1756_s25 + $0x3c4] ss:$16 sps:$4 sm:$0xff]   ;;  %v1544_v40 = vld [vmem:[%s1756_s25 + $0x3c0] ss:$16 sps:$4 sm:$0xff]   ;;  %v1608_v20 = vld [vmem:[%s1756_s25 + $0x28c] ss:$16 sps:$4 sm:$0xff]  }
  0x2b   : > { %1071 = vmatprep.subr.bf16.mxu1 %v1517_v22  ;;  %v1545_v41 = vld [vmem:[%s1756_s25 + $0x1a4] ss:$16 sps:$4 sm:$0xff]   ;;  %v1549_v43 = vld [vmem:[%s1756_s25 + $0x1a0] ss:$16 sps:$4 sm:$0xff]   ;;  %v1603_v21 = vld [vmem:[%s1756_s25 + $0x88] ss:$16 sps:$4 sm:$0xff]  }
  0x2c   : > { %v1547_v42 = vld [vmem:[%s1756_s25 + $0x3a4] ss:$16 sps:$4 sm:$0xff]   ;;  %v1550_v44 = vld [vmem:[%s1756_s25 + $0x3a0] ss:$16 sps:$4 sm:$0xff]   ;;  %v1606_v22 = vld [vmem:[%s1756_s25 + $0x288] ss:$16 sps:$4 sm:$0xff]  }
  0x2d   : > { %1031 = vmatpush1.bf16.msra.mxu0 %v1519_v23  ;;  %v1551_v45 = vld [vmem:[%s1756_s25 + $0x184] ss:$16 sps:$4 sm:$0xff]   ;;  %v1555_v50 = vld [vmem:[%s1756_s25 + $0x180] ss:$16 sps:$4 sm:$0xff]   ;;  %v1611_v23 = vld [vmem:[%s1756_s25 + $0x6c] ss:$16 sps:$4 sm:$0xff]  }
  0x2e   : > { %1072 = vmatpush1.bf16.msra.mxu1 %v1520_v24  ;;  %1032 = vmatprep.subr.bf16.mxu0 %v1521_v25  ;;  %v1553_v46 = vld [vmem:[%s1756_s25 + $0x384] ss:$16 sps:$4 sm:$0xff]   ;;  %v1556_v51 = vld [vmem:[%s1756_s25 + $0x380] ss:$16 sps:$4 sm:$0xff]   ;;  %v1614_v24 = vld [vmem:[%s1756_s25 + $0x26c] ss:$16 sps:$4 sm:$0xff]  }
  0x2f   : > { %1073 = vmatprep.subr.bf16.mxu1 %v1523_v26  ;;  %v236_v47 = vld [vmem:[%s1751_s21] sm:$0xff]  ;;  %v1609_v25 = vld [vmem:[%s1756_s25 + $0x68] ss:$16 sps:$4 sm:$0xff]  }
  0x30   : > { %v1806_v48 = vcombine.high %v236_v47, %v236_v47  ;;  %v1557_v53 = vld [vmem:[%s1756_s25 + $0x164] ss:$16 sps:$4 sm:$0xff]   ;;  %v1561_v55 = vld [vmem:[%s1756_s25 + $0x160] ss:$16 sps:$4 sm:$0xff]   ;;  %v1830_v7 = vcombine.low %v236_v47, %v236_v47  ;;  %v1612_v26 = vld [vmem:[%s1756_s25 + $0x268] ss:$16 sps:$4 sm:$0xff]  }
  0x31   : > { %1033 = vmatpush1.bf16.msra.mxu0 %v1525_v27  ;;  %v1559_v54 = vld [vmem:[%s1756_s25 + $0x364] ss:$16 sps:$4 sm:$0xff]   ;;  %v1562_v56 = vld [vmem:[%s1756_s25 + $0x360] ss:$16 sps:$4 sm:$0xff]   ;;  %v1617_v27 = vld [vmem:[%s1756_s25 + $0x4c] ss:$16 sps:$4 sm:$0xff]  }
  0x32   : > { %1074 = vmatpush1.bf16.msra.mxu1 %v1526_v28  ;;  %1034 = vmatprep.subr.bf16.mxu0 %v1527_v29  ;;  %v1563_v57 = vld [vmem:[%s1756_s25 + $0x144] ss:$16 sps:$4 sm:$0xff]   ;;  %v1567_v59 = vld [vmem:[%s1756_s25 + $0x140] ss:$16 sps:$4 sm:$0xff]   ;;  %v1620_v28 = vld [vmem:[%s1756_s25 + $0x24c] ss:$16 sps:$4 sm:$0xff]  }
  0x33   : > { %1075 = vmatprep.subr.bf16.mxu1 %v1529_v30  ;;  %1052 = vmatprep.mubr.bf16.mxu0 %v1806_v48  ;;  %v1565_v58 = vld [vmem:[%s1756_s25 + $0x344] ss:$16 sps:$4 sm:$0xff]   ;;  %v1568_v60 = vld [vmem:[%s1756_s25 + $0x340] ss:$16 sps:$4 sm:$0xff]   ;;  %v1615_v29 = vld [vmem:[%s1756_s25 + $0x48] ss:$16 sps:$4 sm:$0xff]  }
  0x34   : > { %v1569_v61 = vld [vmem:[%s1756_s25 + $0x124] ss:$16 sps:$4 sm:$0xff]   ;;  %v1573_v63 = vld [vmem:[%s1756_s25 + $0x120] ss:$16 sps:$4 sm:$0xff]   ;;  %v1618_v30 = vld [vmem:[%s1756_s25 + $0x248] ss:$16 sps:$4 sm:$0xff]  }
  0x35   : > { %1035 = vmatpush1.bf16.msra.mxu0 %v1531_v31  ;;  %v1571_v62 = vld [vmem:[%s1756_s25 + $0x324] ss:$16 sps:$4 sm:$0xff]   ;;  %v1574_v0 = vld [vmem:[%s1756_s25 + $0x320] ss:$16 sps:$4 sm:$0xff]   ;;  %v1623_v31 = vld [vmem:[%s1756_s25 + $0x2c] ss:$16 sps:$4 sm:$0xff]  }
  0x36   : > { %1076 = vmatpush1.bf16.msra.mxu1 %v1532_v32  ;;  %1036 = vmatprep.subr.bf16.mxu0 %v1533_v33  ;;  %v1575_v1 = vld [vmem:[%s1756_s25 + $0x104] ss:$16 sps:$4 sm:$0xff]   ;;  %v1579_v3 = vld [vmem:[%s1756_s25 + $0x100] ss:$16 sps:$4 sm:$0xff]   ;;  %v1626_v32 = vld [vmem:[%s1756_s25 + $0x22c] ss:$16 sps:$4 sm:$0xff]  }
  0x37   : > { %1077 = vmatprep.subr.bf16.mxu1 %v1535_v34  ;;  %v1577_v2 = vld [vmem:[%s1756_s25 + $0x304] ss:$16 sps:$4 sm:$0xff]   ;;  %v1580_v4 = vld [vmem:[%s1756_s25 + $0x300] ss:$16 sps:$4 sm:$0xff]   ;;  %v1621_v33 = vld [vmem:[%s1756_s25 + $0x28] ss:$16 sps:$4 sm:$0xff]  }
  0x38   : > { %v1624_v34 = vld [vmem:[%s1756_s25 + $0x228] ss:$16 sps:$4 sm:$0xff]   ;;  %v1647_v47 = vld [vmem:[%s1756_s25 + $0x1ac] ss:$16 sps:$4 sm:$0xff]  }
  0x39   : > { %1037 = vmatpush2.bf16.msra.mxu0 %v1537_v35  ;;  %v1629_v35 = vld [vmem:[%s1756_s25 + $0xc] ss:$16 sps:$4 sm:$0xff]  }
  0x3a   : > { %1078 = vmatpush2.bf16.msra.mxu1 %v1538_v36  ;;  %1038 = vmatprep.subr.bf16.mxu0 %v1539_v37  ;;  %v1632_v36 = vld [vmem:[%s1756_s25 + $0x20c] ss:$16 sps:$4 sm:$0xff]   ;;  %v1627_v37 = vld [vmem:[%s1756_s25 + $0x8] ss:$16 sps:$4 sm:$0xff]  }
  0x3b   : > { %1079 = vmatprep.subr.bf16.mxu1 %v1541_v38  ;;  %v1630_v38 = vld [vmem:[%s1756_s25 + $0x208] ss:$16 sps:$4 sm:$0xff]  }
  0x3d   : > { %1039 = vmatpush2.bf16.msra.mxu0 %v1543_v39  ;;  %v1635_v39 = vld [vmem:[%s1756_s25 + $0x1ec] ss:$16 sps:$4 sm:$0xff]  }
  0x3e   : > { %1080 = vmatpush2.bf16.msra.mxu1 %v1544_v40  ;;  %1040 = vmatprep.subr.bf16.mxu0 %v1545_v41  ;;  %v1638_v40 = vld [vmem:[%s1756_s25 + $0x3ec] ss:$16 sps:$4 sm:$0xff]   ;;  %v1633_v41 = vld [vmem:[%s1756_s25 + $0x1e8] ss:$16 sps:$4 sm:$0xff]  }
  0x3f   : > { %1081 = vmatprep.subr.bf16.mxu1 %v1547_v42  ;;  %v1636_v42 = vld [vmem:[%s1756_s25 + $0x3e8] ss:$16 sps:$4 sm:$0xff]  }
  0x41   : > { %1041 = vmatpush2.bf16.msra.mxu0 %v1549_v43  ;;  %v1641_v43 = vld [vmem:[%s1756_s25 + $0x1cc] ss:$16 sps:$4 sm:$0xff]  }
  0x42   : > { %1082 = vmatpush2.bf16.msra.mxu1 %v1550_v44  ;;  %1042 = vmatprep.subr.bf16.mxu0 %v1551_v45  ;;  %v1644_v44 = vld [vmem:[%s1756_s25 + $0x3cc] ss:$16 sps:$4 sm:$0xff]   ;;  %v1639_v45 = vld [vmem:[%s1756_s25 + $0x1c8] ss:$16 sps:$4 sm:$0xff]  }
  0x43   : > { %1083 = vmatprep.subr.bf16.mxu1 %v1553_v46  ;;  %v1642_v46 = vld [vmem:[%s1756_s25 + $0x3c8] ss:$16 sps:$4 sm:$0xff]  }
  0x45   : > { %1043 = vmatpush2.bf16.msra.mxu0 %v1555_v50  ;;  %v1648_v50 = vld [vmem:[%s1756_s25 + $0x3a8] ss:$16 sps:$4 sm:$0xff]  }
  0x46   : > { %1084 = vmatpush2.bf16.msra.mxu1 %v1556_v51  ;;  %1044 = vmatprep.subr.bf16.mxu0 %v1557_v53  ;;  %v1653_v51 = vld [vmem:[%s1756_s25 + $0x18c] ss:$16 sps:$4 sm:$0xff]   ;;  %v1651_v53 = vld [vmem:[%s1756_s25 + $0x188] ss:$16 sps:$4 sm:$0xff]  }
  0x47   : > { %1085 = vmatprep.subr.bf16.mxu1 %v1559_v54  ;;  %v1654_v54 = vld [vmem:[%s1756_s25 + $0x388] ss:$16 sps:$4 sm:$0xff]  }
  0x49   : > { %1045 = vmatpush2.bf16.msra.mxu0 %v1561_v55  ;;  %v1659_v55 = vld [vmem:[%s1756_s25 + $0x16c] ss:$16 sps:$4 sm:$0xff]  }
  0x4a   : > { %1086 = vmatpush2.bf16.msra.mxu1 %v1562_v56  ;;  %1046 = vmatprep.subr.bf16.mxu0 %v1563_v57  ;;  %v1662_v56 = vld [vmem:[%s1756_s25 + $0x36c] ss:$16 sps:$4 sm:$0xff]   ;;  %v1657_v57 = vld [vmem:[%s1756_s25 + $0x168] ss:$16 sps:$4 sm:$0xff]  }
  0x4b   : > { %1087 = vmatprep.subr.bf16.mxu1 %v1565_v58  ;;  %v1660_v58 = vld [vmem:[%s1756_s25 + $0x368] ss:$16 sps:$4 sm:$0xff]  }
  0x4d   : > { %1047 = vmatpush2.bf16.msra.mxu0 %v1567_v59  ;;  %v1665_v59 = vld [vmem:[%s1756_s25 + $0x14c] ss:$16 sps:$4 sm:$0xff]  }
  0x4e   : > { %1088 = vmatpush2.bf16.msra.mxu1 %v1568_v60  ;;  %1048 = vmatprep.subr.bf16.mxu0 %v1569_v61  ;;  %v1668_v60 = vld [vmem:[%s1756_s25 + $0x34c] ss:$16 sps:$4 sm:$0xff]   ;;  %v1663_v61 = vld [vmem:[%s1756_s25 + $0x148] ss:$16 sps:$4 sm:$0xff]  }
  0x4f   : > { %1089 = vmatprep.subr.bf16.mxu1 %v1571_v62  ;;  %v1666_v62 = vld [vmem:[%s1756_s25 + $0x348] ss:$16 sps:$4 sm:$0xff]  }
  0x51   : > { %1049 = vmatpush2.bf16.msra.mxu0 %v1573_v63  ;;  %v1671_v63 = vld [vmem:[%s1756_s25 + $0x12c] ss:$16 sps:$4 sm:$0xff]  }
  0x52   : > { %1090 = vmatpush2.bf16.msra.mxu1 %v1574_v0  ;;  %1050 = vmatprep.subr.bf16.mxu0 %v1575_v1  ;;  %v1674_v0 = vld [vmem:[%s1756_s25 + $0x32c] ss:$16 sps:$4 sm:$0xff]   ;;  %v1669_v1 = vld [vmem:[%s1756_s25 + $0x128] ss:$16 sps:$4 sm:$0xff]  }
  0x53   : > { %1091 = vmatprep.subr.bf16.mxu1 %v1577_v2  ;;  %v1672_v2 = vld [vmem:[%s1756_s25 + $0x328] ss:$16 sps:$4 sm:$0xff]  }
  0x55   : > { %1051 = vmatpush2.bf16.msra.mxu0 %v1579_v3  ;;  %v1677_v3 = vld [vmem:[%s1756_s25 + $0x10c] ss:$16 sps:$4 sm:$0xff]  }
  0x56   : > { %1092 = vmatpush2.bf16.msra.mxu1 %v1580_v4  ;;  %1102 = vmatprep.subr.bf16.mxu0 %v1587_v5  ;;  %v1680_v4 = vld [vmem:[%s1756_s25 + $0x30c] ss:$16 sps:$4 sm:$0xff]   ;;  %v1675_v5 = vld [vmem:[%s1756_s25 + $0x108] ss:$16 sps:$4 sm:$0xff]  }
  0x57   : > { %1143 = vmatprep.subr.bf16.mxu1 %v1590_v6  ;;  %v1678_v6 = vld [vmem:[%s1756_s25 + $0x308] ss:$16 sps:$4 sm:$0xff]  }
  0x58   : > { %1053 = vmatmul.mubr.bf16.vlgmr.msra.gmra.mxu0 %v1830_v7 }
  0x59   : > { %1094 = vmatmul.mubr.bf16.vlgmr.msra.gmra.mxu1 %v1832_v8  ;;  %1103 = vmatpush1.bf16.msra.mxu0 %v1585_v9 }
  0x5a   : > { %1144 = vmatpush1.bf16.msra.mxu1 %v1588_v10  ;;  %1104 = vmatprep.subr.bf16.mxu0 %v1593_v11  ;;  %v232_v10 = vld [vmem:[#allocation2 + $0x10] sm:$0xff] }
  0x5b   : > { %1145 = vmatprep.subr.bf16.mxu1 %v1596_v12  ;;  %1134 = vmatprep.mubr.bf16.mxu0 %v1806_v48  ;;  %v1650_v48 = vld [vmem:[%s1756_s25 + $0x3ac] ss:$16 sps:$4 sm:$0xff]  }
  0x5c   : > { %1175 = vmatprep.mubr.bf16.mxu1 %v1326_v52  ;;  %v1656_v52 = vld [vmem:[%s1756_s25 + $0x38c] ss:$16 sps:$4 sm:$0xff]  }
  0x5d   : > { %1105 = vmatpush1.bf16.msra.mxu0 %v1591_v13 }
  0x5e   : > { %1146 = vmatpush1.bf16.msra.mxu1 %v1594_v14  ;;  %1106 = vmatprep.subr.bf16.mxu0 %v1599_v15  ;;  %v233_v14 = vld [vmem:[#allocation2] sm:$0xff] }
  0x5f   : > { %1147 = vmatprep.subr.bf16.mxu1 %v1602_v16 }
  0x61   : > { %1107 = vmatpush1.bf16.msra.mxu0 %v1597_v17 }
  0x62   : > { %1148 = vmatpush1.bf16.msra.mxu1 %v1600_v18  ;;  %1108 = vmatprep.subr.bf16.mxu0 %v1605_v19 }
  0x63   : > { %1149 = vmatprep.subr.bf16.mxu1 %v1608_v20 }
  0x65   : > { %1109 = vmatpush1.bf16.msra.mxu0 %v1603_v21 }
  0x66   : > { %1150 = vmatpush1.bf16.msra.mxu1 %v1606_v22  ;;  %1110 = vmatprep.subr.bf16.mxu0 %v1611_v23 }
  0x67   : > { %1151 = vmatprep.subr.bf16.mxu1 %v1614_v24 }
  0x69   : > { %1111 = vmatpush1.bf16.msra.mxu0 %v1609_v25 }
  0x6a   : > { %1152 = vmatpush1.bf16.msra.mxu1 %v1612_v26  ;;  %1112 = vmatprep.subr.bf16.mxu0 %v1617_v27  ;;  %v235_v26 = vld [vmem:[#allocation2 + $0x8] sm:$0xff] }
  0x6b   : > { %1153 = vmatprep.subr.bf16.mxu1 %v1620_v28 }
  0x6d   : > { %1113 = vmatpush1.bf16.msra.mxu0 %v1615_v29 }
  0x6e   : > { %1154 = vmatpush1.bf16.msra.mxu1 %v1618_v30  ;;  %1114 = vmatprep.subr.bf16.mxu0 %v1623_v31 }
  0x6f   : > { %1155 = vmatprep.subr.bf16.mxu1 %v1626_v32 }
  0x71   : > { %1115 = vmatpush1.bf16.msra.mxu0 %v1621_v33 }
  0x72   : > { %1156 = vmatpush1.bf16.msra.mxu1 %v1624_v34  ;;  %1116 = vmatprep.subr.bf16.mxu0 %v1629_v35 }
  0x73   : > { %1157 = vmatprep.subr.bf16.mxu1 %v1632_v36 }
  0x75   : > { %1117 = vmatpush1.bf16.msra.mxu0 %v1627_v37 }
  0x76   : > { %1158 = vmatpush1.bf16.msra.mxu1 %v1630_v38  ;;  %1118 = vmatprep.subr.bf16.mxu0 %v1635_v39 }
  0x77   : > { %1159 = vmatprep.subr.bf16.mxu1 %v1638_v40 }
  0x79   : > { %1119 = vmatpush2.bf16.msra.mxu0 %v1633_v41 }
  0x7a   : > { %1160 = vmatpush2.bf16.msra.mxu1 %v1636_v42  ;;  %1120 = vmatprep.subr.bf16.mxu0 %v1641_v43 }
  0x7b   : > { %1161 = vmatprep.subr.bf16.mxu1 %v1644_v44 }
  0x7d   : > { %1121 = vmatpush2.bf16.msra.mxu0 %v1639_v45 }
  0x7e   : > { %1162 = vmatpush2.bf16.msra.mxu1 %v1642_v46  ;;  %1122 = vmatprep.subr.bf16.mxu0 %v1647_v47 }
  0x7f   : > { %1163 = vmatprep.subr.bf16.mxu1 %v1650_v48 }
  0x81   : > { %1123 = vmatpush2.bf16.msra.mxu0 %v1645_v49 }
  0x82   : > { %1164 = vmatpush2.bf16.msra.mxu1 %v1648_v50  ;;  %1124 = vmatprep.subr.bf16.mxu0 %v1653_v51 }
  0x83   : > { %1165 = vmatprep.subr.bf16.mxu1 %v1656_v52 }
  0x85   : > { %1125 = vmatpush2.bf16.msra.mxu0 %v1651_v53 }
  0x86   : > { %1166 = vmatpush2.bf16.msra.mxu1 %v1654_v54  ;;  %1126 = vmatprep.subr.bf16.mxu0 %v1659_v55 }
  0x87   : > { %1167 = vmatprep.subr.bf16.mxu1 %v1662_v56 }
  0x89   : > { %1127 = vmatpush2.bf16.msra.mxu0 %v1657_v57 }
  0x8a   : > { %1168 = vmatpush2.bf16.msra.mxu1 %v1660_v58  ;;  %1128 = vmatprep.subr.bf16.mxu0 %v1665_v59 }
  0x8b   : > { %1169 = vmatprep.subr.bf16.mxu1 %v1668_v60 }
  0x8d   : > { %1129 = vmatpush2.bf16.msra.mxu0 %v1663_v61 }
  0x8e   : > { %1170 = vmatpush2.bf16.msra.mxu1 %v1666_v62  ;;  %1130 = vmatprep.subr.bf16.mxu0 %v1671_v63 }
  0x8f   : > { %1171 = vmatprep.subr.bf16.mxu1 %v1674_v0 }
  0x91   : > { %1131 = vmatpush2.bf16.msra.mxu0 %v1669_v1 }
  0x92   : > { %1172 = vmatpush2.bf16.msra.mxu1 %v1672_v2  ;;  %1132 = vmatprep.subr.bf16.mxu0 %v1677_v3 }
  0x93   : > { %1173 = vmatprep.subr.bf16.mxu1 %v1680_v4 }
  0x95   : > { %1133 = vmatpush2.bf16.msra.mxu0 %v1675_v5 }
  0x96   : > { %1174 = vmatpush2.bf16.msra.mxu1 %v1678_v6 }
  0x98   : > { %1135 = vmatmul.mubr.bf16.vlgmr.msra.gmra.mxu0 %v1830_v7  ;;  %v234_v7 = vld [vmem:[#allocation2 + $0x18] sm:$0xff] }
  0x99   : > { %1176 = vmatmul.mubr.bf16.vlgmr.msra.gmra.mxu1 %v1832_v8 }
 0x118   : > { %v1054_v9 = vpop.f32.mrf.mxu0 }
 0x119   : > { %v1095_v11 = vpop.f32.mrf.mxu1 }
 0x11a   : > { %v1096_v12 = vadd.f32 %v1095_v11, %v1054_v9  ;;  %v1056_v13 = vpop.f32.mrf.mxu0 }
 0x11b   : > { %v1097_v15 = vpop.f32.mrf.mxu1 }
 0x11c   : > { %v1184_v16 = vadd.f32 %v1096_v12, %v232_v10  ;;  %v1098_v17 = vadd.f32 %v1097_v15, %v1056_v13  ;;  %v1058_v18 = vpop.f32.mrf.mxu0 }
 0x11d   : > { %v1099_v19 = vpop.f32.mrf.mxu1 }
 0x11e   : > { %1188 = vst [vmem:[#allocation2 + $0x10] sm:$0xff] %v1184_v16  ;;  %v1185_v20 = vadd.f32 %v1098_v17, %v233_v14  ;;  %v1059_v21 = vpop.f32.mrf.mxu0 }
 0x11f   : > { %v1100_v22 = vpop.f32.mrf.mxu1 }
 0x120   : > { %1189 = vst [vmem:[#allocation2] sm:$0xff] %v1185_v20 }
 0x158   : > { %v1136_v23 = vpop.f32.mrf.mxu0 }
 0x159   : > { %v1177_v24 = vpop.f32.mrf.mxu1 }
 0x15a   : > { %v1178_v8 = vadd.f32 %v1177_v24, %v1136_v23  ;;  %v1138_v25 = vpop.f32.mrf.mxu0 }
 0x15b   : > { %v1179_v27 = vpop.f32.mrf.mxu1 }
 0x15c   : > { %v1186_v28 = vadd.f32 %v1178_v8, %v234_v7  ;;  %v1180_v29 = vadd.f32 %v1179_v27, %v1138_v25  ;;  %v1140_v30 = vpop.f32.mrf.mxu0  ;;  %1195 = sbr.rel (%p1455_p7) target bundleno = 367 (0x16f), region = 40 }
 0x15d   : > { %v1181_v31 = vpop.f32.mrf.mxu1 }
 0x15e   : > { %1190 = vst [vmem:[#allocation2 + $0x18] sm:$0xff] %v1186_v28  ;;  %v1187_v32 = vadd.f32 %v1180_v29, %v235_v26  ;;  %v1141_v33 = vpop.f32.mrf.mxu0 }
 0x15f   : > { %v1182_v34 = vpop.f32.mrf.mxu1 }
 0x160   : > { %1191 = vst [vmem:[#allocation2 + $0x8] sm:$0xff] %v1187_v32 }
 0x161   : > { %v1202_v35 = vlaneseq  ;;  %v1200_v37 = vld [vmem:[%s1928_s2] sm:$0xf]  ;;  %v1196_v38 = vld [vmem:[#allocation2 + $0x10] sm:$0xff] }
 0x162   : > { %v1197_v43 = vld [vmem:[#allocation2] sm:$0xff] }
 0x163   : > { %v1203_v36 = vshrl.u32 %v1202_v35, 7 }
 0x165   : > { %v1204_v39 = vsub.s32 0, %v1203_v36  ;;  %v1208_v40 = vsub.s32 1, %v1203_v36  ;;  %v1212_v41 = vsub.s32 2, %v1203_v36  ;;  %v1216_v42 = vsub.s32 3, %v1203_v36  ;;  %v1198_v44 = vld [vmem:[#allocation2 + $0x18] sm:$0xff] }
 0x167   : > { %v1199_v45 = vld [vmem:[#allocation2 + $0x8] sm:$0xff]  ;;  %v1205_v46 = vrot.slane %v1200_v37, %v1204_v39  ;;  %v1209_v47 = vrot.slane %v1200_v37, %v1208_v40  ;;  %v1213_v48 = vrot.slane %v1200_v37, %v1212_v41  ;;  %v1217_v49 = vrot.slane %v1200_v37, %v1216_v42 }
 0x169   : > { %v1222_v50 = vadd.f32 %v1205_v46, %v1196_v38  ;;  %v1223_v51 = vadd.f32 %v1209_v47, %v1197_v43  ;;  %v1224_v52 = vadd.f32 %v1213_v48, %v1198_v44  ;;  %v1225_v53 = vadd.f32 %v1217_v49, %v1199_v45 }
 0x16b   : > { %v1226_v54 = vmax.f32 %v1222_v50, 0.0  ;;  %v1227_v55 = vmax.f32 %v1223_v51, 0.0  ;;  %v1228_v56 = vmax.f32 %v1224_v52, 0.0  ;;  %v1229_v57 = vmax.f32 %v1225_v53, 0.0 }
 0x16d   : > { %1230 = vst [vmem:[%s1929_s3] sm:$0xff] %v1226_v54  ;;  %1231 = vst [vmem:[%s1929_s3 + $0x8] sm:$0xff] %v1227_v55 }
 0x16e   : > { %1232 = vst [vmem:[%s1929_s3 + $0x10] sm:$0xff] %v1228_v56  ;;  %1233 = vst [vmem:[%s1929_s3 + $0x18] sm:$0xff] %v1229_v57 }
 0x16f PF: > { %s13_s14 = sadd.s32 1, %s1703_s14   ;;  %s1930_s12 = smov %s1699_s13 }
 0x170   : > { %p10_p8 = scmp.ge.s32.totalorder %s13_s14, 6   ;;  %s1931_s13 = smov %s1933_s15 }
 0x172   :  { %12 = sbr.rel (!%p10_p8) target bundleno = 2 (0x2), region = 73 }

</bundles_post_ra>
